<compile_context>
chip_gen: v7x
topology: tpu7x:2x2x1
jax: 0.10.0
libtpu: 0.0.40
codegen_flags: <defaults>
</compile_context>

<pallas_src>
import jax
import jax.numpy as jnp
import numpy as np
from jax import lax
from jax.experimental import pallas as pl
from jax.experimental.pallas import tpu as pltpu

N_EMBD = 4
NUM_EXPERTS = 8
TOP_K = 3

LANE = 128          # tokens per lane-row
CHUNK = 8           # sublane rows per inner-loop step (1 vreg per f32 plane)
MAX_TILE_S = 512    # sublane rows per grid step (512*128 = 64K tokens/step)

IDX_BITS = max(1, (NUM_EXPERTS - 1).bit_length())   # 3 bits per expert id


def _round_up(a, b):
    return ((a + b - 1) // b) * b


def _router_kernel(x_ref, w_ref, b_ref, out_ref, idx_ref, wb_ref):
    # x_ref  : (D, TS, 128) f32 VMEM block (tokens on sublane x lane)
    # w_ref  : (E, D) f32 SMEM ; b_ref: (E,) f32 SMEM
    # out_ref: (E, TS, 128) f32 VMEM  — dense router weights
    # idx_ref: (1, TS, 128) i32 VMEM  — K expert ids packed, IDX_BITS each
    # wb_ref : (E, D+1, CHUNK, 128) f32 VMEM scratch (broadcast weights/bias)
    D = x_ref.shape[0]
    E = out_ref.shape[0]
    TS = x_ref.shape[1]
    K = TOP_K

    # Hoist SMEM scalar reads + vector broadcasts out of the chunk loop:
    # materialize every w[e,d] / b[e] as a (CHUNK, 128) plane once per grid
    # step (40 broadcasts vs ~15K vector ops per step -> noise).  Filled
    # unconditionally each step so per-core scratch is always valid even if
    # the "parallel" grid axis is sharded across TensorCores.
    for e in range(E):
        for d in range(D):
            wb_ref[e, d] = jnp.full((CHUNK, LANE), w_ref[e, d], jnp.float32)
        wb_ref[e, D] = jnp.full((CHUNK, LANE), b_ref[e], jnp.float32)

    neg_inf = jnp.float32(-jnp.inf)
    n_chunks = TS // CHUNK

    def chunk(c, carry):
        off = pl.multiple_of(c * CHUNK, CHUNK)
        xc = x_ref[:, pl.ds(off, CHUNK), :].astype(jnp.float32)  # (D, CHUNK, 128)

        # logits[e] = b[e] + sum_d w[e,d] * x[d]  — unrolled VPU FMAs against
        # the pre-broadcast planes (vector loads, no per-chunk broadcasts).
        logits = []
        for e in range(E):
            acc = wb_ref[e, D]
            for d in range(D):
                acc = acc + xc[d] * wb_ref[e, d]
            logits.append(acc)

        # Unrolled top-K over the E planes: per-lane running max / argmax.
        # Strict '>' keeps the lowest expert index on exact ties (matches
        # jax.lax.top_k / torch.topk); values come out in descending order.
        work = list(logits)
        vals, idxs = [], []
        for k in range(K):
            m = work[0]
            mi = jnp.zeros(m.shape, jnp.int32)
            for e in range(1, E):
                better = work[e] > m
                m = jnp.where(better, work[e], m)
                mi = jnp.where(better, jnp.int32(e), mi)
            vals.append(m)
            idxs.append(mi)
            if k + 1 < K:
                for e in range(E):
                    work[e] = jnp.where(mi == e, neg_inf, work[e])

        # Sparse softmax over only the K selected logits.  vals[0] is the row
        # max so its exp is exactly 1; non-selected experts get 0.
        m0 = vals[0]
        exps = [jnp.exp(vals[k] - m0) for k in range(1, K)]
        denom = jnp.float32(1.0) + exps[0]
        for k in range(1, K - 1):
            denom = denom + exps[k]
        inv = pl.reciprocal(denom, approx=True)            # EUP slot
        inv = inv * (jnp.float32(2.0) - denom * inv)       # Newton -> ~f32
        weights = [inv] + [e_ * inv for e_ in exps]        # len K

        # Dense scatter of the K weights back to (E, CHUNK, 128).
        zero = jnp.zeros_like(m0)
        for e in range(E):
            oe = zero
            for k in range(K):
                oe = jnp.where(idxs[k] == e, weights[k], oe)
            out_ref[e, pl.ds(off, CHUNK), :] = oe.astype(out_ref.dtype)

        # Pack the K expert ids (IDX_BITS each) into one int32 plane.
        packed = idxs[0]
        for k in range(1, K):
            packed = packed + idxs[k] * jnp.int32(1 << (IDX_BITS * k))
        idx_ref[0, pl.ds(off, CHUNK), :] = packed
        return carry

    lax.fori_loop(0, n_chunks, chunk, 0)


def topk_router(x_tokens, weight, bias):
    """x_tokens: (T, n_embd) f32, weight: (E, n_embd) f32, bias: (E,) f32.
    Returns (T, E) f32 router weights and (T, K) int32 expert indices."""
    T, D = x_tokens.shape
    E = weight.shape[0]

    # Lane-dense token layout: pad T so the row count R is a multiple of the
    # chunk size, then pick the largest tile that divides R (<= MAX_TILE_S).
    T_pad = _round_up(T, LANE * CHUNK)
    R = T_pad // LANE
    tile_s = min(R, MAX_TILE_S)
    R = _round_up(R, tile_s)
    T_pad = R * LANE

    x_pad = jnp.pad(x_tokens, ((0, T_pad - T), (0, 0)))
    x_t = x_pad.T.reshape(D, R, LANE)        # tokens on (sublane, lane)

    grid = (R // tile_s,)

    out_t, idx_packed = pl.pallas_call(
        _router_kernel,
        out_shape=(
            jax.ShapeDtypeStruct((E, R, LANE), jnp.float32),
            jax.ShapeDtypeStruct((1, R, LANE), jnp.int32),
        ),
        grid=grid,
        in_specs=[
            pl.BlockSpec((D, tile_s, LANE), lambda i: (0, i, 0)),
            pl.BlockSpec(memory_space=pltpu.MemorySpace.SMEM),  # weight (E, D)
            pl.BlockSpec(memory_space=pltpu.MemorySpace.SMEM),  # bias (E,)
        ],
        out_specs=(
            pl.BlockSpec((E, tile_s, LANE), lambda i: (0, i, 0)),
            pl.BlockSpec((1, tile_s, LANE), lambda i: (0, i, 0)),
        ),
        scratch_shapes=[pltpu.VMEM((E, D + 1, CHUNK, LANE), jnp.float32)],
        compiler_params=pltpu.CompilerParams(
            dimension_semantics=("parallel",),
            vmem_limit_bytes=32 * 1024 * 1024,
        ),
    )(x_t, weight, bias)

    # Back to PyTorch-module layout (kept only to match the reference
    # semantics; a fused downstream dispatch kernel would consume the
    # expert-major / packed outputs directly).
    out = out_t.reshape(E, T_pad).T[:T]                       # (T, E)
    packed = idx_packed.reshape(T_pad)[:T]                    # (T,)
    mask = jnp.int32((1 << IDX_BITS) - 1)
    idx = jnp.stack(
        [(packed >> (IDX_BITS * k)) & mask for k in range(TOP_K)], axis=-1)
    return out, idx


def topk_router_module(mh_output, weight, bias):
    """Mirrors TopkRouter.forward.  mh_output: (B, S, n_embd),
    weight: (num_experts, n_embd), bias: (num_experts,)."""
    B, S, D = mh_output.shape
    x = mh_output.reshape(B * S, D)
    out, idx = topk_router(x, weight, bias)
    return out.reshape(B, S, NUM_EXPERTS), idx.reshape(B, S, TOP_K)


if __name__ == "__main__":
    key = jax.random.PRNGKey(0)
    k_x, k_w, k_b = jax.random.split(key, 3)

    B, S = 2, 8
    mh_output = jax.random.normal(k_x, (B, S, N_EMBD), dtype=jnp.float32)

    # nn.Linear(n_embd, num_experts) init: U(-1/sqrt(in), 1/sqrt(in))
    bound = 1.0 / np.sqrt(N_EMBD)
    weight = jax.random.uniform(k_w, (NUM_EXPERTS, N_EMBD), jnp.float32, -bound, bound)
    bias = jax.random.uniform(k_b, (NUM_EXPERTS,), jnp.float32, -bound, bound)

    router_out, indices = topk_router_module(mh_output, weight, bias)
    router_out = jax.block_until_ready(router_out)
    indices = jax.block_until_ready(indices)

    # Pure-JAX reference.
    logits_ref = mh_output @ weight.T + bias
    topv, topi = jax.lax.top_k(logits_ref, TOP_K)
    sparse = jnp.full_like(logits_ref, -jnp.inf).at[
        jnp.arange(B)[:, None, None], jnp.arange(S)[None, :, None], topi
    ].set(topv)
    ref_out = jax.nn.softmax(sparse, axis=-1)

    np.testing.assert_allclose(np.asarray(router_out), np.asarray(ref_out),
                               rtol=1e-4, atol=1e-4)
    np.testing.assert_array_equal(np.asarray(indices), np.asarray(topi))

    assert router_out.shape == (B, S, NUM_EXPERTS)
    assert indices.shape == (B, S, TOP_K)
    print("KERNEL_OK")
</pallas_src>

<mosaic_0001>
module attributes {stable_mosaic.version = 11 : i64} {
  func.func @_router_kernel(%arg0: i32, %arg1: memref<4x8x128xf32, #tpu.memory_space<vmem>>, %arg2: memref<8x4xf32, #tpu.memory_space<smem>>, %arg3: memref<8xf32, #tpu.memory_space<smem>>, %arg4: memref<8x8x128xf32, #tpu.memory_space<vmem>>, %arg5: memref<1x8x128xi32, #tpu.memory_space<vmem>>, %arg6: memref<8x5x8x128xf32, #tpu.memory_space<vmem>>) attributes {dimension_semantics = [#tpu.dimension_semantics<parallel>], iteration_bounds = array<i64: 1>, scalar_prefetch = 0 : i64, scratch_operands = 1 : i64, tpu.core_type = #tpu.core_type<tc>, window_params = [{transform_indices = @transform_0, window_bounds = array<i64: 4, 8, 128>}, {transform_indices = @transform_1, window_bounds = array<i64: 8, 4>}, {transform_indices = @transform_2, window_bounds = array<i64: 8>}, {transform_indices = @transform_3, window_bounds = array<i64: 8, 8, 128>}, {transform_indices = @transform_4, window_bounds = array<i64: 1, 8, 128>}]} {
    %c0 = arith.constant 0 : index
    %c0_0 = arith.constant 0 : index
    %0 = memref.load %arg2[%c0, %c0_0] : memref<8x4xf32, #tpu.memory_space<smem>>
    %1 = vector.broadcast %0 : f32 to vector<8x128xf32>
    %c0_1 = arith.constant 0 : index
    %c0_2 = arith.constant 0 : index
    %c0_3 = arith.constant 0 : index
    %c0_4 = arith.constant 0 : index
    %2 = vector.load %arg6[%c0_1, %c0_2, %c0_3, %c0_4] : memref<8x5x8x128xf32, #tpu.memory_space<vmem>>, vector<1x1x8x128xf32>
    %3 = vector.shape_cast %2 : vector<1x1x8x128xf32> to vector<8x128xf32>
    %4 = vector.shape_cast %1 : vector<8x128xf32> to vector<1x1x8x128xf32>
    tpu.vector_store %arg6[%c0_1, %c0_2, %c0_3, %c0_4], %4 {strides = array<i32>} : memref<8x5x8x128xf32, #tpu.memory_space<vmem>>, vector<1x1x8x128xf32>,
    %c0_5 = arith.constant 0 : index
    %c1 = arith.constant 1 : index
    %5 = memref.load %arg2[%c0_5, %c1] : memref<8x4xf32, #tpu.memory_space<smem>>
    %6 = vector.broadcast %5 : f32 to vector<8x128xf32>
    %c0_6 = arith.constant 0 : index
    %c1_7 = arith.constant 1 : index
    %c0_8 = arith.constant 0 : index
    %c0_9 = arith.constant 0 : index
    %7 = vector.load %arg6[%c0_6, %c1_7, %c0_8, %c0_9] : memref<8x5x8x128xf32, #tpu.memory_space<vmem>>, vector<1x1x8x128xf32>
    %8 = vector.shape_cast %7 : vector<1x1x8x128xf32> to vector<8x128xf32>
    %9 = vector.shape_cast %6 : vector<8x128xf32> to vector<1x1x8x128xf32>
    tpu.vector_store %arg6[%c0_6, %c1_7, %c0_8, %c0_9], %9 {strides = array<i32>} : memref<8x5x8x128xf32, #tpu.memory_space<vmem>>, vector<1x1x8x128xf32>,
    %c0_10 = arith.constant 0 : index
    %c2 = arith.constant 2 : index
    %10 = memref.load %arg2[%c0_10, %c2] : memref<8x4xf32, #tpu.memory_space<smem>>
    %11 = vector.broadcast %10 : f32 to vector<8x128xf32>
    %c0_11 = arith.constant 0 : index
    %c2_12 = arith.constant 2 : index
    %c0_13 = arith.constant 0 : index
    %c0_14 = arith.constant 0 : index
    %12 = vector.load %arg6[%c0_11, %c2_12, %c0_13, %c0_14] : memref<8x5x8x128xf32, #tpu.memory_space<vmem>>, vector<1x1x8x128xf32>
    %13 = vector.shape_cast %12 : vector<1x1x8x128xf32> to vector<8x128xf32>
    %14 = vector.shape_cast %11 : vector<8x128xf32> to vector<1x1x8x128xf32>
    tpu.vector_store %arg6[%c0_11, %c2_12, %c0_13, %c0_14], %14 {strides = array<i32>} : memref<8x5x8x128xf32, #tpu.memory_space<vmem>>, vector<1x1x8x128xf32>,
    %c0_15 = arith.constant 0 : index
    %c3 = arith.constant 3 : index
    %15 = memref.load %arg2[%c0_15, %c3] : memref<8x4xf32, #tpu.memory_space<smem>>
    %16 = vector.broadcast %15 : f32 to vector<8x128xf32>
    %c0_16 = arith.constant 0 : index
    %c3_17 = arith.constant 3 : index
    %c0_18 = arith.constant 0 : index
    %c0_19 = arith.constant 0 : index
    %17 = vector.load %arg6[%c0_16, %c3_17, %c0_18, %c0_19] : memref<8x5x8x128xf32, #tpu.memory_space<vmem>>, vector<1x1x8x128xf32>
    %18 = vector.shape_cast %17 : vector<1x1x8x128xf32> to vector<8x128xf32>
    %19 = vector.shape_cast %16 : vector<8x128xf32> to vector<1x1x8x128xf32>
    tpu.vector_store %arg6[%c0_16, %c3_17, %c0_18, %c0_19], %19 {strides = array<i32>} : memref<8x5x8x128xf32, #tpu.memory_space<vmem>>, vector<1x1x8x128xf32>,
    %c0_20 = arith.constant 0 : index
    %20 = memref.load %arg3[%c0_20] : memref<8xf32, #tpu.memory_space<smem>>
    %21 = vector.broadcast %20 : f32 to vector<8x128xf32>
    %c0_21 = arith.constant 0 : index
    %c4 = arith.constant 4 : index
    %c0_22 = arith.constant 0 : index
    %c0_23 = arith.constant 0 : index
    %22 = vector.load %arg6[%c0_21, %c4, %c0_22, %c0_23] : memref<8x5x8x128xf32, #tpu.memory_space<vmem>>, vector<1x1x8x128xf32>
    %23 = vector.shape_cast %22 : vector<1x1x8x128xf32> to vector<8x128xf32>
    %24 = vector.shape_cast %21 : vector<8x128xf32> to vector<1x1x8x128xf32>
    tpu.vector_store %arg6[%c0_21, %c4, %c0_22, %c0_23], %24 {strides = array<i32>} : memref<8x5x8x128xf32, #tpu.memory_space<vmem>>, vector<1x1x8x128xf32>,
    %c1_24 = arith.constant 1 : index
    %c0_25 = arith.constant 0 : index
    %25 = memref.load %arg2[%c1_24, %c0_25] : memref<8x4xf32, #tpu.memory_space<smem>>
    %26 = vector.broadcast %25 : f32 to vector<8x128xf32>
    %c1_26 = arith.constant 1 : index
    %c0_27 = arith.constant 0 : index
    %c0_28 = arith.constant 0 : index
    %c0_29 = arith.constant 0 : index
    %27 = vector.load %arg6[%c1_26, %c0_27, %c0_28, %c0_29] : memref<8x5x8x128xf32, #tpu.memory_space<vmem>>, vector<1x1x8x128xf32>
    %28 = vector.shape_cast %27 : vector<1x1x8x128xf32> to vector<8x128xf32>
    %29 = vector.shape_cast %26 : vector<8x128xf32> to vector<1x1x8x128xf32>
    tpu.vector_store %arg6[%c1_26, %c0_27, %c0_28, %c0_29], %29 {strides = array<i32>} : memref<8x5x8x128xf32, #tpu.memory_space<vmem>>, vector<1x1x8x128xf32>,
    %c1_30 = arith.constant 1 : index
    %c1_31 = arith.constant 1 : index
    %30 = memref.load %arg2[%c1_30, %c1_31] : memref<8x4xf32, #tpu.memory_space<smem>>
    %31 = vector.broadcast %30 : f32 to vector<8x128xf32>
    %c1_32 = arith.constant 1 : index
    %c1_33 = arith.constant 1 : index
    %c0_34 = arith.constant 0 : index
    %c0_35 = arith.constant 0 : index
    %32 = vector.load %arg6[%c1_32, %c1_33, %c0_34, %c0_35] : memref<8x5x8x128xf32, #tpu.memory_space<vmem>>, vector<1x1x8x128xf32>
    %33 = vector.shape_cast %32 : vector<1x1x8x128xf32> to vector<8x128xf32>
    %34 = vector.shape_cast %31 : vector<8x128xf32> to vector<1x1x8x128xf32>
    tpu.vector_store %arg6[%c1_32, %c1_33, %c0_34, %c0_35], %34 {strides = array<i32>} : memref<8x5x8x128xf32, #tpu.memory_space<vmem>>, vector<1x1x8x128xf32>,
    %c1_36 = arith.constant 1 : index
    %c2_37 = arith.constant 2 : index
    %35 = memref.load %arg2[%c1_36, %c2_37] : memref<8x4xf32, #tpu.memory_space<smem>>
    %36 = vector.broadcast %35 : f32 to vector<8x128xf32>
    %c1_38 = arith.constant 1 : index
    %c2_39 = arith.constant 2 : index
    %c0_40 = arith.constant 0 : index
    %c0_41 = arith.constant 0 : index
    %37 = vector.load %arg6[%c1_38, %c2_39, %c0_40, %c0_41] : memref<8x5x8x128xf32, #tpu.memory_space<vmem>>, vector<1x1x8x128xf32>
    %38 = vector.shape_cast %37 : vector<1x1x8x128xf32> to vector<8x128xf32>
    %39 = vector.shape_cast %36 : vector<8x128xf32> to vector<1x1x8x128xf32>
    tpu.vector_store %arg6[%c1_38, %c2_39, %c0_40, %c0_41], %39 {strides = array<i32>} : memref<8x5x8x128xf32, #tpu.memory_space<vmem>>, vector<1x1x8x128xf32>,
    %c1_42 = arith.constant 1 : index
    %c3_43 = arith.constant 3 : index
    %40 = memref.load %arg2[%c1_42, %c3_43] : memref<8x4xf32, #tpu.memory_space<smem>>
    %41 = vector.broadcast %40 : f32 to vector<8x128xf32>
    %c1_44 = arith.constant 1 : index
    %c3_45 = arith.constant 3 : index
    %c0_46 = arith.constant 0 : index
    %c0_47 = arith.constant 0 : index
    %42 = vector.load %arg6[%c1_44, %c3_45, %c0_46, %c0_47] : memref<8x5x8x128xf32, #tpu.memory_space<vmem>>, vector<1x1x8x128xf32>
    %43 = vector.shape_cast %42 : vector<1x1x8x128xf32> to vector<8x128xf32>
    %44 = vector.shape_cast %41 : vector<8x128xf32> to vector<1x1x8x128xf32>
    tpu.vector_store %arg6[%c1_44, %c3_45, %c0_46, %c0_47], %44 {strides = array<i32>} : memref<8x5x8x128xf32, #tpu.memory_space<vmem>>, vector<1x1x8x128xf32>,
    %c1_48 = arith.constant 1 : index
    %45 = memref.load %arg3[%c1_48] : memref<8xf32, #tpu.memory_space<smem>>
    %46 = vector.broadcast %45 : f32 to vector<8x128xf32>
    %c1_49 = arith.constant 1 : index
    %c4_50 = arith.constant 4 : index
    %c0_51 = arith.constant 0 : index
    %c0_52 = arith.constant 0 : index
    %47 = vector.load %arg6[%c1_49, %c4_50, %c0_51, %c0_52] : memref<8x5x8x128xf32, #tpu.memory_space<vmem>>, vector<1x1x8x128xf32>
    %48 = vector.shape_cast %47 : vector<1x1x8x128xf32> to vector<8x128xf32>
    %49 = vector.shape_cast %46 : vector<8x128xf32> to vector<1x1x8x128xf32>
    tpu.vector_store %arg6[%c1_49, %c4_50, %c0_51, %c0_52], %49 {strides = array<i32>} : memref<8x5x8x128xf32, #tpu.memory_space<vmem>>, vector<1x1x8x128xf32>,
    %c2_53 = arith.constant 2 : index
    %c0_54 = arith.constant 0 : index
    %50 = memref.load %arg2[%c2_53, %c0_54] : memref<8x4xf32, #tpu.memory_space<smem>>
    %51 = vector.broadcast %50 : f32 to vector<8x128xf32>
    %c2_55 = arith.constant 2 : index
    %c0_56 = arith.constant 0 : index
    %c0_57 = arith.constant 0 : index
    %c0_58 = arith.constant 0 : index
    %52 = vector.load %arg6[%c2_55, %c0_56, %c0_57, %c0_58] : memref<8x5x8x128xf32, #tpu.memory_space<vmem>>, vector<1x1x8x128xf32>
    %53 = vector.shape_cast %52 : vector<1x1x8x128xf32> to vector<8x128xf32>
    %54 = vector.shape_cast %51 : vector<8x128xf32> to vector<1x1x8x128xf32>
    tpu.vector_store %arg6[%c2_55, %c0_56, %c0_57, %c0_58], %54 {strides = array<i32>} : memref<8x5x8x128xf32, #tpu.memory_space<vmem>>, vector<1x1x8x128xf32>,
    %c2_59 = arith.constant 2 : index
    %c1_60 = arith.constant 1 : index
    %55 = memref.load %arg2[%c2_59, %c1_60] : memref<8x4xf32, #tpu.memory_space<smem>>
    %56 = vector.broadcast %55 : f32 to vector<8x128xf32>
    %c2_61 = arith.constant 2 : index
    %c1_62 = arith.constant 1 : index
    %c0_63 = arith.constant 0 : index
    %c0_64 = arith.constant 0 : index
    %57 = vector.load %arg6[%c2_61, %c1_62, %c0_63, %c0_64] : memref<8x5x8x128xf32, #tpu.memory_space<vmem>>, vector<1x1x8x128xf32>
    %58 = vector.shape_cast %57 : vector<1x1x8x128xf32> to vector<8x128xf32>
    %59 = vector.shape_cast %56 : vector<8x128xf32> to vector<1x1x8x128xf32>
    tpu.vector_store %arg6[%c2_61, %c1_62, %c0_63, %c0_64], %59 {strides = array<i32>} : memref<8x5x8x128xf32, #tpu.memory_space<vmem>>, vector<1x1x8x128xf32>,
    %c2_65 = arith.constant 2 : index
    %c2_66 = arith.constant 2 : index
    %60 = memref.load %arg2[%c2_65, %c2_66] : memref<8x4xf32, #tpu.memory_space<smem>>
    %61 = vector.broadcast %60 : f32 to vector<8x128xf32>
    %c2_67 = arith.constant 2 : index
    %c2_68 = arith.constant 2 : index
    %c0_69 = arith.constant 0 : index
    %c0_70 = arith.constant 0 : index
    %62 = vector.load %arg6[%c2_67, %c2_68, %c0_69, %c0_70] : memref<8x5x8x128xf32, #tpu.memory_space<vmem>>, vector<1x1x8x128xf32>
    %63 = vector.shape_cast %62 : vector<1x1x8x128xf32> to vector<8x128xf32>
    %64 = vector.shape_cast %61 : vector<8x128xf32> to vector<1x1x8x128xf32>
    tpu.vector_store %arg6[%c2_67, %c2_68, %c0_69, %c0_70], %64 {strides = array<i32>} : memref<8x5x8x128xf32, #tpu.memory_space<vmem>>, vector<1x1x8x128xf32>,
    %c2_71 = arith.constant 2 : index
    %c3_72 = arith.constant 3 : index
    %65 = memref.load %arg2[%c2_71, %c3_72] : memref<8x4xf32, #tpu.memory_space<smem>>
    %66 = vector.broadcast %65 : f32 to vector<8x128xf32>
    %c2_73 = arith.constant 2 : index
    %c3_74 = arith.constant 3 : index
    %c0_75 = arith.constant 0 : index
    %c0_76 = arith.constant 0 : index
    %67 = vector.load %arg6[%c2_73, %c3_74, %c0_75, %c0_76] : memref<8x5x8x128xf32, #tpu.memory_space<vmem>>, vector<1x1x8x128xf32>
    %68 = vector.shape_cast %67 : vector<1x1x8x128xf32> to vector<8x128xf32>
    %69 = vector.shape_cast %66 : vector<8x128xf32> to vector<1x1x8x128xf32>
    tpu.vector_store %arg6[%c2_73, %c3_74, %c0_75, %c0_76], %69 {strides = array<i32>} : memref<8x5x8x128xf32, #tpu.memory_space<vmem>>, vector<1x1x8x128xf32>,
    %c2_77 = arith.constant 2 : index
    %70 = memref.load %arg3[%c2_77] : memref<8xf32, #tpu.memory_space<smem>>
    %71 = vector.broadcast %70 : f32 to vector<8x128xf32>
    %c2_78 = arith.constant 2 : index
    %c4_79 = arith.constant 4 : index
    %c0_80 = arith.constant 0 : index
    %c0_81 = arith.constant 0 : index
    %72 = vector.load %arg6[%c2_78, %c4_79, %c0_80, %c0_81] : memref<8x5x8x128xf32, #tpu.memory_space<vmem>>, vector<1x1x8x128xf32>
    %73 = vector.shape_cast %72 : vector<1x1x8x128xf32> to vector<8x128xf32>
    %74 = vector.shape_cast %71 : vector<8x128xf32> to vector<1x1x8x128xf32>
    tpu.vector_store %arg6[%c2_78, %c4_79, %c0_80, %c0_81], %74 {strides = array<i32>} : memref<8x5x8x128xf32, #tpu.memory_space<vmem>>, vector<1x1x8x128xf32>,
    %c3_82 = arith.constant 3 : index
    %c0_83 = arith.constant 0 : index
    %75 = memref.load %arg2[%c3_82, %c0_83] : memref<8x4xf32, #tpu.memory_space<smem>>
    %76 = vector.broadcast %75 : f32 to vector<8x128xf32>
    %c3_84 = arith.constant 3 : index
    %c0_85 = arith.constant 0 : index
    %c0_86 = arith.constant 0 : index
    %c0_87 = arith.constant 0 : index
    %77 = vector.load %arg6[%c3_84, %c0_85, %c0_86, %c0_87] : memref<8x5x8x128xf32, #tpu.memory_space<vmem>>, vector<1x1x8x128xf32>
    %78 = vector.shape_cast %77 : vector<1x1x8x128xf32> to vector<8x128xf32>
    %79 = vector.shape_cast %76 : vector<8x128xf32> to vector<1x1x8x128xf32>
    tpu.vector_store %arg6[%c3_84, %c0_85, %c0_86, %c0_87], %79 {strides = array<i32>} : memref<8x5x8x128xf32, #tpu.memory_space<vmem>>, vector<1x1x8x128xf32>,
    %c3_88 = arith.constant 3 : index
    %c1_89 = arith.constant 1 : index
    %80 = memref.load %arg2[%c3_88, %c1_89] : memref<8x4xf32, #tpu.memory_space<smem>>
    %81 = vector.broadcast %80 : f32 to vector<8x128xf32>
    %c3_90 = arith.constant 3 : index
    %c1_91 = arith.constant 1 : index
    %c0_92 = arith.constant 0 : index
    %c0_93 = arith.constant 0 : index
    %82 = vector.load %arg6[%c3_90, %c1_91, %c0_92, %c0_93] : memref<8x5x8x128xf32, #tpu.memory_space<vmem>>, vector<1x1x8x128xf32>
    %83 = vector.shape_cast %82 : vector<1x1x8x128xf32> to vector<8x128xf32>
    %84 = vector.shape_cast %81 : vector<8x128xf32> to vector<1x1x8x128xf32>
    tpu.vector_store %arg6[%c3_90, %c1_91, %c0_92, %c0_93], %84 {strides = array<i32>} : memref<8x5x8x128xf32, #tpu.memory_space<vmem>>, vector<1x1x8x128xf32>,
    %c3_94 = arith.constant 3 : index
    %c2_95 = arith.constant 2 : index
    %85 = memref.load %arg2[%c3_94, %c2_95] : memref<8x4xf32, #tpu.memory_space<smem>>
    %86 = vector.broadcast %85 : f32 to vector<8x128xf32>
    %c3_96 = arith.constant 3 : index
    %c2_97 = arith.constant 2 : index
    %c0_98 = arith.constant 0 : index
    %c0_99 = arith.constant 0 : index
    %87 = vector.load %arg6[%c3_96, %c2_97, %c0_98, %c0_99] : memref<8x5x8x128xf32, #tpu.memory_space<vmem>>, vector<1x1x8x128xf32>
    %88 = vector.shape_cast %87 : vector<1x1x8x128xf32> to vector<8x128xf32>
    %89 = vector.shape_cast %86 : vector<8x128xf32> to vector<1x1x8x128xf32>
    tpu.vector_store %arg6[%c3_96, %c2_97, %c0_98, %c0_99], %89 {strides = array<i32>} : memref<8x5x8x128xf32, #tpu.memory_space<vmem>>, vector<1x1x8x128xf32>,
    %c3_100 = arith.constant 3 : index
    %c3_101 = arith.constant 3 : index
    %90 = memref.load %arg2[%c3_100, %c3_101] : memref<8x4xf32, #tpu.memory_space<smem>>
    %91 = vector.broadcast %90 : f32 to vector<8x128xf32>
    %c3_102 = arith.constant 3 : index
    %c3_103 = arith.constant 3 : index
    %c0_104 = arith.constant 0 : index
    %c0_105 = arith.constant 0 : index
    %92 = vector.load %arg6[%c3_102, %c3_103, %c0_104, %c0_105] : memref<8x5x8x128xf32, #tpu.memory_space<vmem>>, vector<1x1x8x128xf32>
    %93 = vector.shape_cast %92 : vector<1x1x8x128xf32> to vector<8x128xf32>
    %94 = vector.shape_cast %91 : vector<8x128xf32> to vector<1x1x8x128xf32>
    tpu.vector_store %arg6[%c3_102, %c3_103, %c0_104, %c0_105], %94 {strides = array<i32>} : memref<8x5x8x128xf32, #tpu.memory_space<vmem>>, vector<1x1x8x128xf32>,
    %c3_106 = arith.constant 3 : index
    %95 = memref.load %arg3[%c3_106] : memref<8xf32, #tpu.memory_space<smem>>
    %96 = vector.broadcast %95 : f32 to vector<8x128xf32>
    %c3_107 = arith.constant 3 : index
    %c4_108 = arith.constant 4 : index
    %c0_109 = arith.constant 0 : index
    %c0_110 = arith.constant 0 : index
    %97 = vector.load %arg6[%c3_107, %c4_108, %c0_109, %c0_110] : memref<8x5x8x128xf32, #tpu.memory_space<vmem>>, vector<1x1x8x128xf32>
    %98 = vector.shape_cast %97 : vector<1x1x8x128xf32> to vector<8x128xf32>
    %99 = vector.shape_cast %96 : vector<8x128xf32> to vector<1x1x8x128xf32>
    tpu.vector_store %arg6[%c3_107, %c4_108, %c0_109, %c0_110], %99 {strides = array<i32>} : memref<8x5x8x128xf32, #tpu.memory_space<vmem>>, vector<1x1x8x128xf32>,
    %c4_111 = arith.constant 4 : index
    %c0_112 = arith.constant 0 : index
    %100 = memref.load %arg2[%c4_111, %c0_112] : memref<8x4xf32, #tpu.memory_space<smem>>
    %101 = vector.broadcast %100 : f32 to vector<8x128xf32>
    %c4_113 = arith.constant 4 : index
    %c0_114 = arith.constant 0 : index
    %c0_115 = arith.constant 0 : index
    %c0_116 = arith.constant 0 : index
    %102 = vector.load %arg6[%c4_113, %c0_114, %c0_115, %c0_116] : memref<8x5x8x128xf32, #tpu.memory_space<vmem>>, vector<1x1x8x128xf32>
    %103 = vector.shape_cast %102 : vector<1x1x8x128xf32> to vector<8x128xf32>
    %104 = vector.shape_cast %101 : vector<8x128xf32> to vector<1x1x8x128xf32>
    tpu.vector_store %arg6[%c4_113, %c0_114, %c0_115, %c0_116], %104 {strides = array<i32>} : memref<8x5x8x128xf32, #tpu.memory_space<vmem>>, vector<1x1x8x128xf32>,
    %c4_117 = arith.constant 4 : index
    %c1_118 = arith.constant 1 : index
    %105 = memref.load %arg2[%c4_117, %c1_118] : memref<8x4xf32, #tpu.memory_space<smem>>
    %106 = vector.broadcast %105 : f32 to vector<8x128xf32>
    %c4_119 = arith.constant 4 : index
    %c1_120 = arith.constant 1 : index
    %c0_121 = arith.constant 0 : index
    %c0_122 = arith.constant 0 : index
    %107 = vector.load %arg6[%c4_119, %c1_120, %c0_121, %c0_122] : memref<8x5x8x128xf32, #tpu.memory_space<vmem>>, vector<1x1x8x128xf32>
    %108 = vector.shape_cast %107 : vector<1x1x8x128xf32> to vector<8x128xf32>
    %109 = vector.shape_cast %106 : vector<8x128xf32> to vector<1x1x8x128xf32>
    tpu.vector_store %arg6[%c4_119, %c1_120, %c0_121, %c0_122], %109 {strides = array<i32>} : memref<8x5x8x128xf32, #tpu.memory_space<vmem>>, vector<1x1x8x128xf32>,
    %c4_123 = arith.constant 4 : index
    %c2_124 = arith.constant 2 : index
    %110 = memref.load %arg2[%c4_123, %c2_124] : memref<8x4xf32, #tpu.memory_space<smem>>
    %111 = vector.broadcast %110 : f32 to vector<8x128xf32>
    %c4_125 = arith.constant 4 : index
    %c2_126 = arith.constant 2 : index
    %c0_127 = arith.constant 0 : index
    %c0_128 = arith.constant 0 : index
    %112 = vector.load %arg6[%c4_125, %c2_126, %c0_127, %c0_128] : memref<8x5x8x128xf32, #tpu.memory_space<vmem>>, vector<1x1x8x128xf32>
    %113 = vector.shape_cast %112 : vector<1x1x8x128xf32> to vector<8x128xf32>
    %114 = vector.shape_cast %111 : vector<8x128xf32> to vector<1x1x8x128xf32>
    tpu.vector_store %arg6[%c4_125, %c2_126, %c0_127, %c0_128], %114 {strides = array<i32>} : memref<8x5x8x128xf32, #tpu.memory_space<vmem>>, vector<1x1x8x128xf32>,
    %c4_129 = arith.constant 4 : index
    %c3_130 = arith.constant 3 : index
    %115 = memref.load %arg2[%c4_129, %c3_130] : memref<8x4xf32, #tpu.memory_space<smem>>
    %116 = vector.broadcast %115 : f32 to vector<8x128xf32>
    %c4_131 = arith.constant 4 : index
    %c3_132 = arith.constant 3 : index
    %c0_133 = arith.constant 0 : index
    %c0_134 = arith.constant 0 : index
    %117 = vector.load %arg6[%c4_131, %c3_132, %c0_133, %c0_134] : memref<8x5x8x128xf32, #tpu.memory_space<vmem>>, vector<1x1x8x128xf32>
    %118 = vector.shape_cast %117 : vector<1x1x8x128xf32> to vector<8x128xf32>
    %119 = vector.shape_cast %116 : vector<8x128xf32> to vector<1x1x8x128xf32>
    tpu.vector_store %arg6[%c4_131, %c3_132, %c0_133, %c0_134], %119 {strides = array<i32>} : memref<8x5x8x128xf32, #tpu.memory_space<vmem>>, vector<1x1x8x128xf32>,
    %c4_135 = arith.constant 4 : index
    %120 = memref.load %arg3[%c4_135] : memref<8xf32, #tpu.memory_space<smem>>
    %121 = vector.broadcast %120 : f32 to vector<8x128xf32>
    %c4_136 = arith.constant 4 : index
    %c4_137 = arith.constant 4 : index
    %c0_138 = arith.constant 0 : index
    %c0_139 = arith.constant 0 : index
    %122 = vector.load %arg6[%c4_136, %c4_137, %c0_138, %c0_139] : memref<8x5x8x128xf32, #tpu.memory_space<vmem>>, vector<1x1x8x128xf32>
    %123 = vector.shape_cast %122 : vector<1x1x8x128xf32> to vector<8x128xf32>
    %124 = vector.shape_cast %121 : vector<8x128xf32> to vector<1x1x8x128xf32>
    tpu.vector_store %arg6[%c4_136, %c4_137, %c0_138, %c0_139], %124 {strides = array<i32>} : memref<8x5x8x128xf32, #tpu.memory_space<vmem>>, vector<1x1x8x128xf32>,
    %c5 = arith.constant 5 : index
    %c0_140 = arith.constant 0 : index
    %125 = memref.load %arg2[%c5, %c0_140] : memref<8x4xf32, #tpu.memory_space<smem>>
    %126 = vector.broadcast %125 : f32 to vector<8x128xf32>
    %c5_141 = arith.constant 5 : index
    %c0_142 = arith.constant 0 : index
    %c0_143 = arith.constant 0 : index
    %c0_144 = arith.constant 0 : index
    %127 = vector.load %arg6[%c5_141, %c0_142, %c0_143, %c0_144] : memref<8x5x8x128xf32, #tpu.memory_space<vmem>>, vector<1x1x8x128xf32>
    %128 = vector.shape_cast %127 : vector<1x1x8x128xf32> to vector<8x128xf32>
    %129 = vector.shape_cast %126 : vector<8x128xf32> to vector<1x1x8x128xf32>
    tpu.vector_store %arg6[%c5_141, %c0_142, %c0_143, %c0_144], %129 {strides = array<i32>} : memref<8x5x8x128xf32, #tpu.memory_space<vmem>>, vector<1x1x8x128xf32>,
    %c5_145 = arith.constant 5 : index
    %c1_146 = arith.constant 1 : index
    %130 = memref.load %arg2[%c5_145, %c1_146] : memref<8x4xf32, #tpu.memory_space<smem>>
    %131 = vector.broadcast %130 : f32 to vector<8x128xf32>
    %c5_147 = arith.constant 5 : index
    %c1_148 = arith.constant 1 : index
    %c0_149 = arith.constant 0 : index
    %c0_150 = arith.constant 0 : index
    %132 = vector.load %arg6[%c5_147, %c1_148, %c0_149, %c0_150] : memref<8x5x8x128xf32, #tpu.memory_space<vmem>>, vector<1x1x8x128xf32>
    %133 = vector.shape_cast %132 : vector<1x1x8x128xf32> to vector<8x128xf32>
    %134 = vector.shape_cast %131 : vector<8x128xf32> to vector<1x1x8x128xf32>
    tpu.vector_store %arg6[%c5_147, %c1_148, %c0_149, %c0_150], %134 {strides = array<i32>} : memref<8x5x8x128xf32, #tpu.memory_space<vmem>>, vector<1x1x8x128xf32>,
    %c5_151 = arith.constant 5 : index
    %c2_152 = arith.constant 2 : index
    %135 = memref.load %arg2[%c5_151, %c2_152] : memref<8x4xf32, #tpu.memory_space<smem>>
    %136 = vector.broadcast %135 : f32 to vector<8x128xf32>
    %c5_153 = arith.constant 5 : index
    %c2_154 = arith.constant 2 : index
    %c0_155 = arith.constant 0 : index
    %c0_156 = arith.constant 0 : index
    %137 = vector.load %arg6[%c5_153, %c2_154, %c0_155, %c0_156] : memref<8x5x8x128xf32, #tpu.memory_space<vmem>>, vector<1x1x8x128xf32>
    %138 = vector.shape_cast %137 : vector<1x1x8x128xf32> to vector<8x128xf32>
    %139 = vector.shape_cast %136 : vector<8x128xf32> to vector<1x1x8x128xf32>
    tpu.vector_store %arg6[%c5_153, %c2_154, %c0_155, %c0_156], %139 {strides = array<i32>} : memref<8x5x8x128xf32, #tpu.memory_space<vmem>>, vector<1x1x8x128xf32>,
    %c5_157 = arith.constant 5 : index
    %c3_158 = arith.constant 3 : index
    %140 = memref.load %arg2[%c5_157, %c3_158] : memref<8x4xf32, #tpu.memory_space<smem>>
    %141 = vector.broadcast %140 : f32 to vector<8x128xf32>
    %c5_159 = arith.constant 5 : index
    %c3_160 = arith.constant 3 : index
    %c0_161 = arith.constant 0 : index
    %c0_162 = arith.constant 0 : index
    %142 = vector.load %arg6[%c5_159, %c3_160, %c0_161, %c0_162] : memref<8x5x8x128xf32, #tpu.memory_space<vmem>>, vector<1x1x8x128xf32>
    %143 = vector.shape_cast %142 : vector<1x1x8x128xf32> to vector<8x128xf32>
    %144 = vector.shape_cast %141 : vector<8x128xf32> to vector<1x1x8x128xf32>
    tpu.vector_store %arg6[%c5_159, %c3_160, %c0_161, %c0_162], %144 {strides = array<i32>} : memref<8x5x8x128xf32, #tpu.memory_space<vmem>>, vector<1x1x8x128xf32>,
    %c5_163 = arith.constant 5 : index
    %145 = memref.load %arg3[%c5_163] : memref<8xf32, #tpu.memory_space<smem>>
    %146 = vector.broadcast %145 : f32 to vector<8x128xf32>
    %c5_164 = arith.constant 5 : index
    %c4_165 = arith.constant 4 : index
    %c0_166 = arith.constant 0 : index
    %c0_167 = arith.constant 0 : index
    %147 = vector.load %arg6[%c5_164, %c4_165, %c0_166, %c0_167] : memref<8x5x8x128xf32, #tpu.memory_space<vmem>>, vector<1x1x8x128xf32>
    %148 = vector.shape_cast %147 : vector<1x1x8x128xf32> to vector<8x128xf32>
    %149 = vector.shape_cast %146 : vector<8x128xf32> to vector<1x1x8x128xf32>
    tpu.vector_store %arg6[%c5_164, %c4_165, %c0_166, %c0_167], %149 {strides = array<i32>} : memref<8x5x8x128xf32, #tpu.memory_space<vmem>>, vector<1x1x8x128xf32>,
    %c6 = arith.constant 6 : index
    %c0_168 = arith.constant 0 : index
    %150 = memref.load %arg2[%c6, %c0_168] : memref<8x4xf32, #tpu.memory_space<smem>>
    %151 = vector.broadcast %150 : f32 to vector<8x128xf32>
    %c6_169 = arith.constant 6 : index
    %c0_170 = arith.constant 0 : index
    %c0_171 = arith.constant 0 : index
    %c0_172 = arith.constant 0 : index
    %152 = vector.load %arg6[%c6_169, %c0_170, %c0_171, %c0_172] : memref<8x5x8x128xf32, #tpu.memory_space<vmem>>, vector<1x1x8x128xf32>
    %153 = vector.shape_cast %152 : vector<1x1x8x128xf32> to vector<8x128xf32>
    %154 = vector.shape_cast %151 : vector<8x128xf32> to vector<1x1x8x128xf32>
    tpu.vector_store %arg6[%c6_169, %c0_170, %c0_171, %c0_172], %154 {strides = array<i32>} : memref<8x5x8x128xf32, #tpu.memory_space<vmem>>, vector<1x1x8x128xf32>,
    %c6_173 = arith.constant 6 : index
    %c1_174 = arith.constant 1 : index
    %155 = memref.load %arg2[%c6_173, %c1_174] : memref<8x4xf32, #tpu.memory_space<smem>>
    %156 = vector.broadcast %155 : f32 to vector<8x128xf32>
    %c6_175 = arith.constant 6 : index
    %c1_176 = arith.constant 1 : index
    %c0_177 = arith.constant 0 : index
    %c0_178 = arith.constant 0 : index
    %157 = vector.load %arg6[%c6_175, %c1_176, %c0_177, %c0_178] : memref<8x5x8x128xf32, #tpu.memory_space<vmem>>, vector<1x1x8x128xf32>
    %158 = vector.shape_cast %157 : vector<1x1x8x128xf32> to vector<8x128xf32>
    %159 = vector.shape_cast %156 : vector<8x128xf32> to vector<1x1x8x128xf32>
    tpu.vector_store %arg6[%c6_175, %c1_176, %c0_177, %c0_178], %159 {strides = array<i32>} : memref<8x5x8x128xf32, #tpu.memory_space<vmem>>, vector<1x1x8x128xf32>,
    %c6_179 = arith.constant 6 : index
    %c2_180 = arith.constant 2 : index
    %160 = memref.load %arg2[%c6_179, %c2_180] : memref<8x4xf32, #tpu.memory_space<smem>>
    %161 = vector.broadcast %160 : f32 to vector<8x128xf32>
    %c6_181 = arith.constant 6 : index
    %c2_182 = arith.constant 2 : index
    %c0_183 = arith.constant 0 : index
    %c0_184 = arith.constant 0 : index
    %162 = vector.load %arg6[%c6_181, %c2_182, %c0_183, %c0_184] : memref<8x5x8x128xf32, #tpu.memory_space<vmem>>, vector<1x1x8x128xf32>
    %163 = vector.shape_cast %162 : vector<1x1x8x128xf32> to vector<8x128xf32>
    %164 = vector.shape_cast %161 : vector<8x128xf32> to vector<1x1x8x128xf32>
    tpu.vector_store %arg6[%c6_181, %c2_182, %c0_183, %c0_184], %164 {strides = array<i32>} : memref<8x5x8x128xf32, #tpu.memory_space<vmem>>, vector<1x1x8x128xf32>,
    %c6_185 = arith.constant 6 : index
    %c3_186 = arith.constant 3 : index
    %165 = memref.load %arg2[%c6_185, %c3_186] : memref<8x4xf32, #tpu.memory_space<smem>>
    %166 = vector.broadcast %165 : f32 to vector<8x128xf32>
    %c6_187 = arith.constant 6 : index
    %c3_188 = arith.constant 3 : index
    %c0_189 = arith.constant 0 : index
    %c0_190 = arith.constant 0 : index
    %167 = vector.load %arg6[%c6_187, %c3_188, %c0_189, %c0_190] : memref<8x5x8x128xf32, #tpu.memory_space<vmem>>, vector<1x1x8x128xf32>
    %168 = vector.shape_cast %167 : vector<1x1x8x128xf32> to vector<8x128xf32>
    %169 = vector.shape_cast %166 : vector<8x128xf32> to vector<1x1x8x128xf32>
    tpu.vector_store %arg6[%c6_187, %c3_188, %c0_189, %c0_190], %169 {strides = array<i32>} : memref<8x5x8x128xf32, #tpu.memory_space<vmem>>, vector<1x1x8x128xf32>,
    %c6_191 = arith.constant 6 : index
    %170 = memref.load %arg3[%c6_191] : memref<8xf32, #tpu.memory_space<smem>>
    %171 = vector.broadcast %170 : f32 to vector<8x128xf32>
    %c6_192 = arith.constant 6 : index
    %c4_193 = arith.constant 4 : index
    %c0_194 = arith.constant 0 : index
    %c0_195 = arith.constant 0 : index
    %172 = vector.load %arg6[%c6_192, %c4_193, %c0_194, %c0_195] : memref<8x5x8x128xf32, #tpu.memory_space<vmem>>, vector<1x1x8x128xf32>
    %173 = vector.shape_cast %172 : vector<1x1x8x128xf32> to vector<8x128xf32>
    %174 = vector.shape_cast %171 : vector<8x128xf32> to vector<1x1x8x128xf32>
    tpu.vector_store %arg6[%c6_192, %c4_193, %c0_194, %c0_195], %174 {strides = array<i32>} : memref<8x5x8x128xf32, #tpu.memory_space<vmem>>, vector<1x1x8x128xf32>,
    %c7 = arith.constant 7 : index
    %c0_196 = arith.constant 0 : index
    %175 = memref.load %arg2[%c7, %c0_196] : memref<8x4xf32, #tpu.memory_space<smem>>
    %176 = vector.broadcast %175 : f32 to vector<8x128xf32>
    %c7_197 = arith.constant 7 : index
    %c0_198 = arith.constant 0 : index
    %c0_199 = arith.constant 0 : index
    %c0_200 = arith.constant 0 : index
    %177 = vector.load %arg6[%c7_197, %c0_198, %c0_199, %c0_200] : memref<8x5x8x128xf32, #tpu.memory_space<vmem>>, vector<1x1x8x128xf32>
    %178 = vector.shape_cast %177 : vector<1x1x8x128xf32> to vector<8x128xf32>
    %179 = vector.shape_cast %176 : vector<8x128xf32> to vector<1x1x8x128xf32>
    tpu.vector_store %arg6[%c7_197, %c0_198, %c0_199, %c0_200], %179 {strides = array<i32>} : memref<8x5x8x128xf32, #tpu.memory_space<vmem>>, vector<1x1x8x128xf32>,
    %c7_201 = arith.constant 7 : index
    %c1_202 = arith.constant 1 : index
    %180 = memref.load %arg2[%c7_201, %c1_202] : memref<8x4xf32, #tpu.memory_space<smem>>
    %181 = vector.broadcast %180 : f32 to vector<8x128xf32>
    %c7_203 = arith.constant 7 : index
    %c1_204 = arith.constant 1 : index
    %c0_205 = arith.constant 0 : index
    %c0_206 = arith.constant 0 : index
    %182 = vector.load %arg6[%c7_203, %c1_204, %c0_205, %c0_206] : memref<8x5x8x128xf32, #tpu.memory_space<vmem>>, vector<1x1x8x128xf32>
    %183 = vector.shape_cast %182 : vector<1x1x8x128xf32> to vector<8x128xf32>
    %184 = vector.shape_cast %181 : vector<8x128xf32> to vector<1x1x8x128xf32>
    tpu.vector_store %arg6[%c7_203, %c1_204, %c0_205, %c0_206], %184 {strides = array<i32>} : memref<8x5x8x128xf32, #tpu.memory_space<vmem>>, vector<1x1x8x128xf32>,
    %c7_207 = arith.constant 7 : index
    %c2_208 = arith.constant 2 : index
    %185 = memref.load %arg2[%c7_207, %c2_208] : memref<8x4xf32, #tpu.memory_space<smem>>
    %186 = vector.broadcast %185 : f32 to vector<8x128xf32>
    %c7_209 = arith.constant 7 : index
    %c2_210 = arith.constant 2 : index
    %c0_211 = arith.constant 0 : index
    %c0_212 = arith.constant 0 : index
    %187 = vector.load %arg6[%c7_209, %c2_210, %c0_211, %c0_212] : memref<8x5x8x128xf32, #tpu.memory_space<vmem>>, vector<1x1x8x128xf32>
    %188 = vector.shape_cast %187 : vector<1x1x8x128xf32> to vector<8x128xf32>
    %189 = vector.shape_cast %186 : vector<8x128xf32> to vector<1x1x8x128xf32>
    tpu.vector_store %arg6[%c7_209, %c2_210, %c0_211, %c0_212], %189 {strides = array<i32>} : memref<8x5x8x128xf32, #tpu.memory_space<vmem>>, vector<1x1x8x128xf32>,
    %c7_213 = arith.constant 7 : index
    %c3_214 = arith.constant 3 : index
    %190 = memref.load %arg2[%c7_213, %c3_214] : memref<8x4xf32, #tpu.memory_space<smem>>
    %191 = vector.broadcast %190 : f32 to vector<8x128xf32>
    %c7_215 = arith.constant 7 : index
    %c3_216 = arith.constant 3 : index
    %c0_217 = arith.constant 0 : index
    %c0_218 = arith.constant 0 : index
    %192 = vector.load %arg6[%c7_215, %c3_216, %c0_217, %c0_218] : memref<8x5x8x128xf32, #tpu.memory_space<vmem>>, vector<1x1x8x128xf32>
    %193 = vector.shape_cast %192 : vector<1x1x8x128xf32> to vector<8x128xf32>
    %194 = vector.shape_cast %191 : vector<8x128xf32> to vector<1x1x8x128xf32>
    tpu.vector_store %arg6[%c7_215, %c3_216, %c0_217, %c0_218], %194 {strides = array<i32>} : memref<8x5x8x128xf32, #tpu.memory_space<vmem>>, vector<1x1x8x128xf32>,
    %c7_219 = arith.constant 7 : index
    %195 = memref.load %arg3[%c7_219] : memref<8xf32, #tpu.memory_space<smem>>
    %196 = vector.broadcast %195 : f32 to vector<8x128xf32>
    %c7_220 = arith.constant 7 : index
    %c4_221 = arith.constant 4 : index
    %c0_222 = arith.constant 0 : index
    %c0_223 = arith.constant 0 : index
    %197 = vector.load %arg6[%c7_220, %c4_221, %c0_222, %c0_223] : memref<8x5x8x128xf32, #tpu.memory_space<vmem>>, vector<1x1x8x128xf32>
    %198 = vector.shape_cast %197 : vector<1x1x8x128xf32> to vector<8x128xf32>
    %199 = vector.shape_cast %196 : vector<8x128xf32> to vector<1x1x8x128xf32>
    tpu.vector_store %arg6[%c7_220, %c4_221, %c0_222, %c0_223], %199 {strides = array<i32>} : memref<8x5x8x128xf32, #tpu.memory_space<vmem>>, vector<1x1x8x128xf32>,
    %cst = arith.constant 0xFF800000 : f32
    %c0_i32 = arith.constant 0 : i32
    %c8_i32 = arith.constant 8 : i32
    %200 = arith.muli %c0_i32, %c8_i32 : i32
    %201 = tpu.assume_multiple %200, 8 : i32
    %c0_224 = arith.constant 0 : index
    %202 = arith.index_cast %201 : i32 to index
    %c0_225 = arith.constant 0 : index
    %203 = vector.load %arg1[%c0_224, %202, %c0_225] : memref<4x8x128xf32, #tpu.memory_space<vmem>>, vector<4x8x128xf32>
    %c0_226 = arith.constant 0 : index
    %c4_227 = arith.constant 4 : index
    %c0_228 = arith.constant 0 : index
    %c0_229 = arith.constant 0 : index
    %204 = vector.load %arg6[%c0_226, %c4_227, %c0_228, %c0_229] : memref<8x5x8x128xf32, #tpu.memory_space<vmem>>, vector<1x1x8x128xf32>
    %205 = vector.shape_cast %204 : vector<1x1x8x128xf32> to vector<8x128xf32>
    %206 = vector.extract_strided_slice %203 {offsets = [0, 0, 0], sizes = [1, 8, 128], strides = [1, 1, 1]} : vector<4x8x128xf32> to vector<1x8x128xf32>
    %207 = vector.shape_cast %206 : vector<1x8x128xf32> to vector<8x128xf32>
    %c0_230 = arith.constant 0 : index
    %c0_231 = arith.constant 0 : index
    %c0_232 = arith.constant 0 : index
    %c0_233 = arith.constant 0 : index
    %208 = vector.load %arg6[%c0_230, %c0_231, %c0_232, %c0_233] : memref<8x5x8x128xf32, #tpu.memory_space<vmem>>, vector<1x1x8x128xf32>
    %209 = vector.shape_cast %208 : vector<1x1x8x128xf32> to vector<8x128xf32>
    %210 = arith.mulf %207, %209 : vector<8x128xf32>
    %211 = arith.addf %205, %210 : vector<8x128xf32>
    %212 = vector.extract_strided_slice %203 {offsets = [1, 0, 0], sizes = [1, 8, 128], strides = [1, 1, 1]} : vector<4x8x128xf32> to vector<1x8x128xf32>
    %213 = vector.shape_cast %212 : vector<1x8x128xf32> to vector<8x128xf32>
    %c0_234 = arith.constant 0 : index
    %c1_235 = arith.constant 1 : index
    %c0_236 = arith.constant 0 : index
    %c0_237 = arith.constant 0 : index
    %214 = vector.load %arg6[%c0_234, %c1_235, %c0_236, %c0_237] : memref<8x5x8x128xf32, #tpu.memory_space<vmem>>, vector<1x1x8x128xf32>
    %215 = vector.shape_cast %214 : vector<1x1x8x128xf32> to vector<8x128xf32>
    %216 = arith.mulf %213, %215 : vector<8x128xf32>
    %217 = arith.addf %211, %216 : vector<8x128xf32>
    %218 = vector.extract_strided_slice %203 {offsets = [2, 0, 0], sizes = [1, 8, 128], strides = [1, 1, 1]} : vector<4x8x128xf32> to vector<1x8x128xf32>
    %219 = vector.shape_cast %218 : vector<1x8x128xf32> to vector<8x128xf32>
    %c0_238 = arith.constant 0 : index
    %c2_239 = arith.constant 2 : index
    %c0_240 = arith.constant 0 : index
    %c0_241 = arith.constant 0 : index
    %220 = vector.load %arg6[%c0_238, %c2_239, %c0_240, %c0_241] : memref<8x5x8x128xf32, #tpu.memory_space<vmem>>, vector<1x1x8x128xf32>
    %221 = vector.shape_cast %220 : vector<1x1x8x128xf32> to vector<8x128xf32>
    %222 = arith.mulf %219, %221 : vector<8x128xf32>
    %223 = arith.addf %217, %222 : vector<8x128xf32>
    %224 = vector.extract_strided_slice %203 {offsets = [3, 0, 0], sizes = [1, 8, 128], strides = [1, 1, 1]} : vector<4x8x128xf32> to vector<1x8x128xf32>
    %225 = vector.shape_cast %224 : vector<1x8x128xf32> to vector<8x128xf32>
    %c0_242 = arith.constant 0 : index
    %c3_243 = arith.constant 3 : index
    %c0_244 = arith.constant 0 : index
    %c0_245 = arith.constant 0 : index
    %226 = vector.load %arg6[%c0_242, %c3_243, %c0_244, %c0_245] : memref<8x5x8x128xf32, #tpu.memory_space<vmem>>, vector<1x1x8x128xf32>
    %227 = vector.shape_cast %226 : vector<1x1x8x128xf32> to vector<8x128xf32>
    %228 = arith.mulf %225, %227 : vector<8x128xf32>
    %229 = arith.addf %223, %228 : vector<8x128xf32>
    %c1_246 = arith.constant 1 : index
    %c4_247 = arith.constant 4 : index
    %c0_248 = arith.constant 0 : index
    %c0_249 = arith.constant 0 : index
    %230 = vector.load %arg6[%c1_246, %c4_247, %c0_248, %c0_249] : memref<8x5x8x128xf32, #tpu.memory_space<vmem>>, vector<1x1x8x128xf32>
    %231 = vector.shape_cast %230 : vector<1x1x8x128xf32> to vector<8x128xf32>
    %232 = vector.extract_strided_slice %203 {offsets = [0, 0, 0], sizes = [1, 8, 128], strides = [1, 1, 1]} : vector<4x8x128xf32> to vector<1x8x128xf32>
    %233 = vector.shape_cast %232 : vector<1x8x128xf32> to vector<8x128xf32>
    %c1_250 = arith.constant 1 : index
    %c0_251 = arith.constant 0 : index
    %c0_252 = arith.constant 0 : index
    %c0_253 = arith.constant 0 : index
    %234 = vector.load %arg6[%c1_250, %c0_251, %c0_252, %c0_253] : memref<8x5x8x128xf32, #tpu.memory_space<vmem>>, vector<1x1x8x128xf32>
    %235 = vector.shape_cast %234 : vector<1x1x8x128xf32> to vector<8x128xf32>
    %236 = arith.mulf %233, %235 : vector<8x128xf32>
    %237 = arith.addf %231, %236 : vector<8x128xf32>
    %238 = vector.extract_strided_slice %203 {offsets = [1, 0, 0], sizes = [1, 8, 128], strides = [1, 1, 1]} : vector<4x8x128xf32> to vector<1x8x128xf32>
    %239 = vector.shape_cast %238 : vector<1x8x128xf32> to vector<8x128xf32>
    %c1_254 = arith.constant 1 : index
    %c1_255 = arith.constant 1 : index
    %c0_256 = arith.constant 0 : index
    %c0_257 = arith.constant 0 : index
    %240 = vector.load %arg6[%c1_254, %c1_255, %c0_256, %c0_257] : memref<8x5x8x128xf32, #tpu.memory_space<vmem>>, vector<1x1x8x128xf32>
    %241 = vector.shape_cast %240 : vector<1x1x8x128xf32> to vector<8x128xf32>
    %242 = arith.mulf %239, %241 : vector<8x128xf32>
    %243 = arith.addf %237, %242 : vector<8x128xf32>
    %244 = vector.extract_strided_slice %203 {offsets = [2, 0, 0], sizes = [1, 8, 128], strides = [1, 1, 1]} : vector<4x8x128xf32> to vector<1x8x128xf32>
    %245 = vector.shape_cast %244 : vector<1x8x128xf32> to vector<8x128xf32>
    %c1_258 = arith.constant 1 : index
    %c2_259 = arith.constant 2 : index
    %c0_260 = arith.constant 0 : index
    %c0_261 = arith.constant 0 : index
    %246 = vector.load %arg6[%c1_258, %c2_259, %c0_260, %c0_261] : memref<8x5x8x128xf32, #tpu.memory_space<vmem>>, vector<1x1x8x128xf32>
    %247 = vector.shape_cast %246 : vector<1x1x8x128xf32> to vector<8x128xf32>
    %248 = arith.mulf %245, %247 : vector<8x128xf32>
    %249 = arith.addf %243, %248 : vector<8x128xf32>
    %250 = vector.extract_strided_slice %203 {offsets = [3, 0, 0], sizes = [1, 8, 128], strides = [1, 1, 1]} : vector<4x8x128xf32> to vector<1x8x128xf32>
    %251 = vector.shape_cast %250 : vector<1x8x128xf32> to vector<8x128xf32>
    %c1_262 = arith.constant 1 : index
    %c3_263 = arith.constant 3 : index
    %c0_264 = arith.constant 0 : index
    %c0_265 = arith.constant 0 : index
    %252 = vector.load %arg6[%c1_262, %c3_263, %c0_264, %c0_265] : memref<8x5x8x128xf32, #tpu.memory_space<vmem>>, vector<1x1x8x128xf32>
    %253 = vector.shape_cast %252 : vector<1x1x8x128xf32> to vector<8x128xf32>
    %254 = arith.mulf %251, %253 : vector<8x128xf32>
    %255 = arith.addf %249, %254 : vector<8x128xf32>
    %c2_266 = arith.constant 2 : index
    %c4_267 = arith.constant 4 : index
    %c0_268 = arith.constant 0 : index
    %c0_269 = arith.constant 0 : index
    %256 = vector.load %arg6[%c2_266, %c4_267, %c0_268, %c0_269] : memref<8x5x8x128xf32, #tpu.memory_space<vmem>>, vector<1x1x8x128xf32>
    %257 = vector.shape_cast %256 : vector<1x1x8x128xf32> to vector<8x128xf32>
    %258 = vector.extract_strided_slice %203 {offsets = [0, 0, 0], sizes = [1, 8, 128], strides = [1, 1, 1]} : vector<4x8x128xf32> to vector<1x8x128xf32>
    %259 = vector.shape_cast %258 : vector<1x8x128xf32> to vector<8x128xf32>
    %c2_270 = arith.constant 2 : index
    %c0_271 = arith.constant 0 : index
    %c0_272 = arith.constant 0 : index
    %c0_273 = arith.constant 0 : index
    %260 = vector.load %arg6[%c2_270, %c0_271, %c0_272, %c0_273] : memref<8x5x8x128xf32, #tpu.memory_space<vmem>>, vector<1x1x8x128xf32>
    %261 = vector.shape_cast %260 : vector<1x1x8x128xf32> to vector<8x128xf32>
    %262 = arith.mulf %259, %261 : vector<8x128xf32>
    %263 = arith.addf %257, %262 : vector<8x128xf32>
    %264 = vector.extract_strided_slice %203 {offsets = [1, 0, 0], sizes = [1, 8, 128], strides = [1, 1, 1]} : vector<4x8x128xf32> to vector<1x8x128xf32>
    %265 = vector.shape_cast %264 : vector<1x8x128xf32> to vector<8x128xf32>
    %c2_274 = arith.constant 2 : index
    %c1_275 = arith.constant 1 : index
    %c0_276 = arith.constant 0 : index
    %c0_277 = arith.constant 0 : index
    %266 = vector.load %arg6[%c2_274, %c1_275, %c0_276, %c0_277] : memref<8x5x8x128xf32, #tpu.memory_space<vmem>>, vector<1x1x8x128xf32>
    %267 = vector.shape_cast %266 : vector<1x1x8x128xf32> to vector<8x128xf32>
    %268 = arith.mulf %265, %267 : vector<8x128xf32>
    %269 = arith.addf %263, %268 : vector<8x128xf32>
    %270 = vector.extract_strided_slice %203 {offsets = [2, 0, 0], sizes = [1, 8, 128], strides = [1, 1, 1]} : vector<4x8x128xf32> to vector<1x8x128xf32>
    %271 = vector.shape_cast %270 : vector<1x8x128xf32> to vector<8x128xf32>
    %c2_278 = arith.constant 2 : index
    %c2_279 = arith.constant 2 : index
    %c0_280 = arith.constant 0 : index
    %c0_281 = arith.constant 0 : index
    %272 = vector.load %arg6[%c2_278, %c2_279, %c0_280, %c0_281] : memref<8x5x8x128xf32, #tpu.memory_space<vmem>>, vector<1x1x8x128xf32>
    %273 = vector.shape_cast %272 : vector<1x1x8x128xf32> to vector<8x128xf32>
    %274 = arith.mulf %271, %273 : vector<8x128xf32>
    %275 = arith.addf %269, %274 : vector<8x128xf32>
    %276 = vector.extract_strided_slice %203 {offsets = [3, 0, 0], sizes = [1, 8, 128], strides = [1, 1, 1]} : vector<4x8x128xf32> to vector<1x8x128xf32>
    %277 = vector.shape_cast %276 : vector<1x8x128xf32> to vector<8x128xf32>
    %c2_282 = arith.constant 2 : index
    %c3_283 = arith.constant 3 : index
    %c0_284 = arith.constant 0 : index
    %c0_285 = arith.constant 0 : index
    %278 = vector.load %arg6[%c2_282, %c3_283, %c0_284, %c0_285] : memref<8x5x8x128xf32, #tpu.memory_space<vmem>>, vector<1x1x8x128xf32>
    %279 = vector.shape_cast %278 : vector<1x1x8x128xf32> to vector<8x128xf32>
    %280 = arith.mulf %277, %279 : vector<8x128xf32>
    %281 = arith.addf %275, %280 : vector<8x128xf32>
    %c3_286 = arith.constant 3 : index
    %c4_287 = arith.constant 4 : index
    %c0_288 = arith.constant 0 : index
    %c0_289 = arith.constant 0 : index
    %282 = vector.load %arg6[%c3_286, %c4_287, %c0_288, %c0_289] : memref<8x5x8x128xf32, #tpu.memory_space<vmem>>, vector<1x1x8x128xf32>
    %283 = vector.shape_cast %282 : vector<1x1x8x128xf32> to vector<8x128xf32>
    %284 = vector.extract_strided_slice %203 {offsets = [0, 0, 0], sizes = [1, 8, 128], strides = [1, 1, 1]} : vector<4x8x128xf32> to vector<1x8x128xf32>
    %285 = vector.shape_cast %284 : vector<1x8x128xf32> to vector<8x128xf32>
    %c3_290 = arith.constant 3 : index
    %c0_291 = arith.constant 0 : index
    %c0_292 = arith.constant 0 : index
    %c0_293 = arith.constant 0 : index
    %286 = vector.load %arg6[%c3_290, %c0_291, %c0_292, %c0_293] : memref<8x5x8x128xf32, #tpu.memory_space<vmem>>, vector<1x1x8x128xf32>
    %287 = vector.shape_cast %286 : vector<1x1x8x128xf32> to vector<8x128xf32>
    %288 = arith.mulf %285, %287 : vector<8x128xf32>
    %289 = arith.addf %283, %288 : vector<8x128xf32>
    %290 = vector.extract_strided_slice %203 {offsets = [1, 0, 0], sizes = [1, 8, 128], strides = [1, 1, 1]} : vector<4x8x128xf32> to vector<1x8x128xf32>
    %291 = vector.shape_cast %290 : vector<1x8x128xf32> to vector<8x128xf32>
    %c3_294 = arith.constant 3 : index
    %c1_295 = arith.constant 1 : index
    %c0_296 = arith.constant 0 : index
    %c0_297 = arith.constant 0 : index
    %292 = vector.load %arg6[%c3_294, %c1_295, %c0_296, %c0_297] : memref<8x5x8x128xf32, #tpu.memory_space<vmem>>, vector<1x1x8x128xf32>
    %293 = vector.shape_cast %292 : vector<1x1x8x128xf32> to vector<8x128xf32>
    %294 = arith.mulf %291, %293 : vector<8x128xf32>
    %295 = arith.addf %289, %294 : vector<8x128xf32>
    %296 = vector.extract_strided_slice %203 {offsets = [2, 0, 0], sizes = [1, 8, 128], strides = [1, 1, 1]} : vector<4x8x128xf32> to vector<1x8x128xf32>
    %297 = vector.shape_cast %296 : vector<1x8x128xf32> to vector<8x128xf32>
    %c3_298 = arith.constant 3 : index
    %c2_299 = arith.constant 2 : index
    %c0_300 = arith.constant 0 : index
    %c0_301 = arith.constant 0 : index
    %298 = vector.load %arg6[%c3_298, %c2_299, %c0_300, %c0_301] : memref<8x5x8x128xf32, #tpu.memory_space<vmem>>, vector<1x1x8x128xf32>
    %299 = vector.shape_cast %298 : vector<1x1x8x128xf32> to vector<8x128xf32>
    %300 = arith.mulf %297, %299 : vector<8x128xf32>
    %301 = arith.addf %295, %300 : vector<8x128xf32>
    %302 = vector.extract_strided_slice %203 {offsets = [3, 0, 0], sizes = [1, 8, 128], strides = [1, 1, 1]} : vector<4x8x128xf32> to vector<1x8x128xf32>
    %303 = vector.shape_cast %302 : vector<1x8x128xf32> to vector<8x128xf32>
    %c3_302 = arith.constant 3 : index
    %c3_303 = arith.constant 3 : index
    %c0_304 = arith.constant 0 : index
    %c0_305 = arith.constant 0 : index
    %304 = vector.load %arg6[%c3_302, %c3_303, %c0_304, %c0_305] : memref<8x5x8x128xf32, #tpu.memory_space<vmem>>, vector<1x1x8x128xf32>
    %305 = vector.shape_cast %304 : vector<1x1x8x128xf32> to vector<8x128xf32>
    %306 = arith.mulf %303, %305 : vector<8x128xf32>
    %307 = arith.addf %301, %306 : vector<8x128xf32>
    %c4_306 = arith.constant 4 : index
    %c4_307 = arith.constant 4 : index
    %c0_308 = arith.constant 0 : index
    %c0_309 = arith.constant 0 : index
    %308 = vector.load %arg6[%c4_306, %c4_307, %c0_308, %c0_309] : memref<8x5x8x128xf32, #tpu.memory_space<vmem>>, vector<1x1x8x128xf32>
    %309 = vector.shape_cast %308 : vector<1x1x8x128xf32> to vector<8x128xf32>
    %310 = vector.extract_strided_slice %203 {offsets = [0, 0, 0], sizes = [1, 8, 128], strides = [1, 1, 1]} : vector<4x8x128xf32> to vector<1x8x128xf32>
    %311 = vector.shape_cast %310 : vector<1x8x128xf32> to vector<8x128xf32>
    %c4_310 = arith.constant 4 : index
    %c0_311 = arith.constant 0 : index
    %c0_312 = arith.constant 0 : index
    %c0_313 = arith.constant 0 : index
    %312 = vector.load %arg6[%c4_310, %c0_311, %c0_312, %c0_313] : memref<8x5x8x128xf32, #tpu.memory_space<vmem>>, vector<1x1x8x128xf32>
    %313 = vector.shape_cast %312 : vector<1x1x8x128xf32> to vector<8x128xf32>
    %314 = arith.mulf %311, %313 : vector<8x128xf32>
    %315 = arith.addf %309, %314 : vector<8x128xf32>
    %316 = vector.extract_strided_slice %203 {offsets = [1, 0, 0], sizes = [1, 8, 128], strides = [1, 1, 1]} : vector<4x8x128xf32> to vector<1x8x128xf32>
    %317 = vector.shape_cast %316 : vector<1x8x128xf32> to vector<8x128xf32>
    %c4_314 = arith.constant 4 : index
    %c1_315 = arith.constant 1 : index
    %c0_316 = arith.constant 0 : index
    %c0_317 = arith.constant 0 : index
    %318 = vector.load %arg6[%c4_314, %c1_315, %c0_316, %c0_317] : memref<8x5x8x128xf32, #tpu.memory_space<vmem>>, vector<1x1x8x128xf32>
    %319 = vector.shape_cast %318 : vector<1x1x8x128xf32> to vector<8x128xf32>
    %320 = arith.mulf %317, %319 : vector<8x128xf32>
    %321 = arith.addf %315, %320 : vector<8x128xf32>
    %322 = vector.extract_strided_slice %203 {offsets = [2, 0, 0], sizes = [1, 8, 128], strides = [1, 1, 1]} : vector<4x8x128xf32> to vector<1x8x128xf32>
    %323 = vector.shape_cast %322 : vector<1x8x128xf32> to vector<8x128xf32>
    %c4_318 = arith.constant 4 : index
    %c2_319 = arith.constant 2 : index
    %c0_320 = arith.constant 0 : index
    %c0_321 = arith.constant 0 : index
    %324 = vector.load %arg6[%c4_318, %c2_319, %c0_320, %c0_321] : memref<8x5x8x128xf32, #tpu.memory_space<vmem>>, vector<1x1x8x128xf32>
    %325 = vector.shape_cast %324 : vector<1x1x8x128xf32> to vector<8x128xf32>
    %326 = arith.mulf %323, %325 : vector<8x128xf32>
    %327 = arith.addf %321, %326 : vector<8x128xf32>
    %328 = vector.extract_strided_slice %203 {offsets = [3, 0, 0], sizes = [1, 8, 128], strides = [1, 1, 1]} : vector<4x8x128xf32> to vector<1x8x128xf32>
    %329 = vector.shape_cast %328 : vector<1x8x128xf32> to vector<8x128xf32>
    %c4_322 = arith.constant 4 : index
    %c3_323 = arith.constant 3 : index
    %c0_324 = arith.constant 0 : index
    %c0_325 = arith.constant 0 : index
    %330 = vector.load %arg6[%c4_322, %c3_323, %c0_324, %c0_325] : memref<8x5x8x128xf32, #tpu.memory_space<vmem>>, vector<1x1x8x128xf32>
    %331 = vector.shape_cast %330 : vector<1x1x8x128xf32> to vector<8x128xf32>
    %332 = arith.mulf %329, %331 : vector<8x128xf32>
    %333 = arith.addf %327, %332 : vector<8x128xf32>
    %c5_326 = arith.constant 5 : index
    %c4_327 = arith.constant 4 : index
    %c0_328 = arith.constant 0 : index
    %c0_329 = arith.constant 0 : index
    %334 = vector.load %arg6[%c5_326, %c4_327, %c0_328, %c0_329] : memref<8x5x8x128xf32, #tpu.memory_space<vmem>>, vector<1x1x8x128xf32>
    %335 = vector.shape_cast %334 : vector<1x1x8x128xf32> to vector<8x128xf32>
    %336 = vector.extract_strided_slice %203 {offsets = [0, 0, 0], sizes = [1, 8, 128], strides = [1, 1, 1]} : vector<4x8x128xf32> to vector<1x8x128xf32>
    %337 = vector.shape_cast %336 : vector<1x8x128xf32> to vector<8x128xf32>
    %c5_330 = arith.constant 5 : index
    %c0_331 = arith.constant 0 : index
    %c0_332 = arith.constant 0 : index
    %c0_333 = arith.constant 0 : index
    %338 = vector.load %arg6[%c5_330, %c0_331, %c0_332, %c0_333] : memref<8x5x8x128xf32, #tpu.memory_space<vmem>>, vector<1x1x8x128xf32>
    %339 = vector.shape_cast %338 : vector<1x1x8x128xf32> to vector<8x128xf32>
    %340 = arith.mulf %337, %339 : vector<8x128xf32>
    %341 = arith.addf %335, %340 : vector<8x128xf32>
    %342 = vector.extract_strided_slice %203 {offsets = [1, 0, 0], sizes = [1, 8, 128], strides = [1, 1, 1]} : vector<4x8x128xf32> to vector<1x8x128xf32>
    %343 = vector.shape_cast %342 : vector<1x8x128xf32> to vector<8x128xf32>
    %c5_334 = arith.constant 5 : index
    %c1_335 = arith.constant 1 : index
    %c0_336 = arith.constant 0 : index
    %c0_337 = arith.constant 0 : index
    %344 = vector.load %arg6[%c5_334, %c1_335, %c0_336, %c0_337] : memref<8x5x8x128xf32, #tpu.memory_space<vmem>>, vector<1x1x8x128xf32>
    %345 = vector.shape_cast %344 : vector<1x1x8x128xf32> to vector<8x128xf32>
    %346 = arith.mulf %343, %345 : vector<8x128xf32>
    %347 = arith.addf %341, %346 : vector<8x128xf32>
    %348 = vector.extract_strided_slice %203 {offsets = [2, 0, 0], sizes = [1, 8, 128], strides = [1, 1, 1]} : vector<4x8x128xf32> to vector<1x8x128xf32>
    %349 = vector.shape_cast %348 : vector<1x8x128xf32> to vector<8x128xf32>
    %c5_338 = arith.constant 5 : index
    %c2_339 = arith.constant 2 : index
    %c0_340 = arith.constant 0 : index
    %c0_341 = arith.constant 0 : index
    %350 = vector.load %arg6[%c5_338, %c2_339, %c0_340, %c0_341] : memref<8x5x8x128xf32, #tpu.memory_space<vmem>>, vector<1x1x8x128xf32>
    %351 = vector.shape_cast %350 : vector<1x1x8x128xf32> to vector<8x128xf32>
    %352 = arith.mulf %349, %351 : vector<8x128xf32>
    %353 = arith.addf %347, %352 : vector<8x128xf32>
    %354 = vector.extract_strided_slice %203 {offsets = [3, 0, 0], sizes = [1, 8, 128], strides = [1, 1, 1]} : vector<4x8x128xf32> to vector<1x8x128xf32>
    %355 = vector.shape_cast %354 : vector<1x8x128xf32> to vector<8x128xf32>
    %c5_342 = arith.constant 5 : index
    %c3_343 = arith.constant 3 : index
    %c0_344 = arith.constant 0 : index
    %c0_345 = arith.constant 0 : index
    %356 = vector.load %arg6[%c5_342, %c3_343, %c0_344, %c0_345] : memref<8x5x8x128xf32, #tpu.memory_space<vmem>>, vector<1x1x8x128xf32>
    %357 = vector.shape_cast %356 : vector<1x1x8x128xf32> to vector<8x128xf32>
    %358 = arith.mulf %355, %357 : vector<8x128xf32>
    %359 = arith.addf %353, %358 : vector<8x128xf32>
    %c6_346 = arith.constant 6 : index
    %c4_347 = arith.constant 4 : index
    %c0_348 = arith.constant 0 : index
    %c0_349 = arith.constant 0 : index
    %360 = vector.load %arg6[%c6_346, %c4_347, %c0_348, %c0_349] : memref<8x5x8x128xf32, #tpu.memory_space<vmem>>, vector<1x1x8x128xf32>
    %361 = vector.shape_cast %360 : vector<1x1x8x128xf32> to vector<8x128xf32>
    %362 = vector.extract_strided_slice %203 {offsets = [0, 0, 0], sizes = [1, 8, 128], strides = [1, 1, 1]} : vector<4x8x128xf32> to vector<1x8x128xf32>
    %363 = vector.shape_cast %362 : vector<1x8x128xf32> to vector<8x128xf32>
    %c6_350 = arith.constant 6 : index
    %c0_351 = arith.constant 0 : index
    %c0_352 = arith.constant 0 : index
    %c0_353 = arith.constant 0 : index
    %364 = vector.load %arg6[%c6_350, %c0_351, %c0_352, %c0_353] : memref<8x5x8x128xf32, #tpu.memory_space<vmem>>, vector<1x1x8x128xf32>
    %365 = vector.shape_cast %364 : vector<1x1x8x128xf32> to vector<8x128xf32>
    %366 = arith.mulf %363, %365 : vector<8x128xf32>
    %367 = arith.addf %361, %366 : vector<8x128xf32>
    %368 = vector.extract_strided_slice %203 {offsets = [1, 0, 0], sizes = [1, 8, 128], strides = [1, 1, 1]} : vector<4x8x128xf32> to vector<1x8x128xf32>
    %369 = vector.shape_cast %368 : vector<1x8x128xf32> to vector<8x128xf32>
    %c6_354 = arith.constant 6 : index
    %c1_355 = arith.constant 1 : index
    %c0_356 = arith.constant 0 : index
    %c0_357 = arith.constant 0 : index
    %370 = vector.load %arg6[%c6_354, %c1_355, %c0_356, %c0_357] : memref<8x5x8x128xf32, #tpu.memory_space<vmem>>, vector<1x1x8x128xf32>
    %371 = vector.shape_cast %370 : vector<1x1x8x128xf32> to vector<8x128xf32>
    %372 = arith.mulf %369, %371 : vector<8x128xf32>
    %373 = arith.addf %367, %372 : vector<8x128xf32>
    %374 = vector.extract_strided_slice %203 {offsets = [2, 0, 0], sizes = [1, 8, 128], strides = [1, 1, 1]} : vector<4x8x128xf32> to vector<1x8x128xf32>
    %375 = vector.shape_cast %374 : vector<1x8x128xf32> to vector<8x128xf32>
    %c6_358 = arith.constant 6 : index
    %c2_359 = arith.constant 2 : index
    %c0_360 = arith.constant 0 : index
    %c0_361 = arith.constant 0 : index
    %376 = vector.load %arg6[%c6_358, %c2_359, %c0_360, %c0_361] : memref<8x5x8x128xf32, #tpu.memory_space<vmem>>, vector<1x1x8x128xf32>
    %377 = vector.shape_cast %376 : vector<1x1x8x128xf32> to vector<8x128xf32>
    %378 = arith.mulf %375, %377 : vector<8x128xf32>
    %379 = arith.addf %373, %378 : vector<8x128xf32>
    %380 = vector.extract_strided_slice %203 {offsets = [3, 0, 0], sizes = [1, 8, 128], strides = [1, 1, 1]} : vector<4x8x128xf32> to vector<1x8x128xf32>
    %381 = vector.shape_cast %380 : vector<1x8x128xf32> to vector<8x128xf32>
    %c6_362 = arith.constant 6 : index
    %c3_363 = arith.constant 3 : index
    %c0_364 = arith.constant 0 : index
    %c0_365 = arith.constant 0 : index
    %382 = vector.load %arg6[%c6_362, %c3_363, %c0_364, %c0_365] : memref<8x5x8x128xf32, #tpu.memory_space<vmem>>, vector<1x1x8x128xf32>
    %383 = vector.shape_cast %382 : vector<1x1x8x128xf32> to vector<8x128xf32>
    %384 = arith.mulf %381, %383 : vector<8x128xf32>
    %385 = arith.addf %379, %384 : vector<8x128xf32>
    %c7_366 = arith.constant 7 : index
    %c4_367 = arith.constant 4 : index
    %c0_368 = arith.constant 0 : index
    %c0_369 = arith.constant 0 : index
    %386 = vector.load %arg6[%c7_366, %c4_367, %c0_368, %c0_369] : memref<8x5x8x128xf32, #tpu.memory_space<vmem>>, vector<1x1x8x128xf32>
    %387 = vector.shape_cast %386 : vector<1x1x8x128xf32> to vector<8x128xf32>
    %388 = vector.extract_strided_slice %203 {offsets = [0, 0, 0], sizes = [1, 8, 128], strides = [1, 1, 1]} : vector<4x8x128xf32> to vector<1x8x128xf32>
    %389 = vector.shape_cast %388 : vector<1x8x128xf32> to vector<8x128xf32>
    %c7_370 = arith.constant 7 : index
    %c0_371 = arith.constant 0 : index
    %c0_372 = arith.constant 0 : index
    %c0_373 = arith.constant 0 : index
    %390 = vector.load %arg6[%c7_370, %c0_371, %c0_372, %c0_373] : memref<8x5x8x128xf32, #tpu.memory_space<vmem>>, vector<1x1x8x128xf32>
    %391 = vector.shape_cast %390 : vector<1x1x8x128xf32> to vector<8x128xf32>
    %392 = arith.mulf %389, %391 : vector<8x128xf32>
    %393 = arith.addf %387, %392 : vector<8x128xf32>
    %394 = vector.extract_strided_slice %203 {offsets = [1, 0, 0], sizes = [1, 8, 128], strides = [1, 1, 1]} : vector<4x8x128xf32> to vector<1x8x128xf32>
    %395 = vector.shape_cast %394 : vector<1x8x128xf32> to vector<8x128xf32>
    %c7_374 = arith.constant 7 : index
    %c1_375 = arith.constant 1 : index
    %c0_376 = arith.constant 0 : index
    %c0_377 = arith.constant 0 : index
    %396 = vector.load %arg6[%c7_374, %c1_375, %c0_376, %c0_377] : memref<8x5x8x128xf32, #tpu.memory_space<vmem>>, vector<1x1x8x128xf32>
    %397 = vector.shape_cast %396 : vector<1x1x8x128xf32> to vector<8x128xf32>
    %398 = arith.mulf %395, %397 : vector<8x128xf32>
    %399 = arith.addf %393, %398 : vector<8x128xf32>
    %400 = vector.extract_strided_slice %203 {offsets = [2, 0, 0], sizes = [1, 8, 128], strides = [1, 1, 1]} : vector<4x8x128xf32> to vector<1x8x128xf32>
    %401 = vector.shape_cast %400 : vector<1x8x128xf32> to vector<8x128xf32>
    %c7_378 = arith.constant 7 : index
    %c2_379 = arith.constant 2 : index
    %c0_380 = arith.constant 0 : index
    %c0_381 = arith.constant 0 : index
    %402 = vector.load %arg6[%c7_378, %c2_379, %c0_380, %c0_381] : memref<8x5x8x128xf32, #tpu.memory_space<vmem>>, vector<1x1x8x128xf32>
    %403 = vector.shape_cast %402 : vector<1x1x8x128xf32> to vector<8x128xf32>
    %404 = arith.mulf %401, %403 : vector<8x128xf32>
    %405 = arith.addf %399, %404 : vector<8x128xf32>
    %406 = vector.extract_strided_slice %203 {offsets = [3, 0, 0], sizes = [1, 8, 128], strides = [1, 1, 1]} : vector<4x8x128xf32> to vector<1x8x128xf32>
    %407 = vector.shape_cast %406 : vector<1x8x128xf32> to vector<8x128xf32>
    %c7_382 = arith.constant 7 : index
    %c3_383 = arith.constant 3 : index
    %c0_384 = arith.constant 0 : index
    %c0_385 = arith.constant 0 : index
    %408 = vector.load %arg6[%c7_382, %c3_383, %c0_384, %c0_385] : memref<8x5x8x128xf32, #tpu.memory_space<vmem>>, vector<1x1x8x128xf32>
    %409 = vector.shape_cast %408 : vector<1x1x8x128xf32> to vector<8x128xf32>
    %410 = arith.mulf %407, %409 : vector<8x128xf32>
    %411 = arith.addf %405, %410 : vector<8x128xf32>
    %c0_i32_386 = arith.constant 0 : i32
    %412 = vector.broadcast %c0_i32_386 : i32 to vector<8x128xi32>
    %413 = arith.cmpf ogt, %255, %229 : vector<8x128xf32>
    %414 = arith.select %413, %255, %229 : vector<8x128xi1>, vector<8x128xf32>
    %c1_i32 = arith.constant 1 : i32
    %415 = vector.broadcast %c1_i32 : i32 to vector<8x128xi32>
    %416 = arith.select %413, %415, %412 : vector<8x128xi1>, vector<8x128xi32>
    %417 = arith.cmpf ogt, %281, %414 : vector<8x128xf32>
    %418 = arith.select %417, %281, %414 : vector<8x128xi1>, vector<8x128xf32>
    %c2_i32 = arith.constant 2 : i32
    %419 = vector.broadcast %c2_i32 : i32 to vector<8x128xi32>
    %420 = arith.select %417, %419, %416 : vector<8x128xi1>, vector<8x128xi32>
    %421 = arith.cmpf ogt, %307, %418 : vector<8x128xf32>
    %422 = arith.select %421, %307, %418 : vector<8x128xi1>, vector<8x128xf32>
    %c3_i32 = arith.constant 3 : i32
    %423 = vector.broadcast %c3_i32 : i32 to vector<8x128xi32>
    %424 = arith.select %421, %423, %420 : vector<8x128xi1>, vector<8x128xi32>
    %425 = arith.cmpf ogt, %333, %422 : vector<8x128xf32>
    %426 = arith.select %425, %333, %422 : vector<8x128xi1>, vector<8x128xf32>
    %c4_i32 = arith.constant 4 : i32
    %427 = vector.broadcast %c4_i32 : i32 to vector<8x128xi32>
    %428 = arith.select %425, %427, %424 : vector<8x128xi1>, vector<8x128xi32>
    %429 = arith.cmpf ogt, %359, %426 : vector<8x128xf32>
    %430 = arith.select %429, %359, %426 : vector<8x128xi1>, vector<8x128xf32>
    %c5_i32 = arith.constant 5 : i32
    %431 = vector.broadcast %c5_i32 : i32 to vector<8x128xi32>
    %432 = arith.select %429, %431, %428 : vector<8x128xi1>, vector<8x128xi32>
    %433 = arith.cmpf ogt, %385, %430 : vector<8x128xf32>
    %434 = arith.select %433, %385, %430 : vector<8x128xi1>, vector<8x128xf32>
    %c6_i32 = arith.constant 6 : i32
    %435 = vector.broadcast %c6_i32 : i32 to vector<8x128xi32>
    %436 = arith.select %433, %435, %432 : vector<8x128xi1>, vector<8x128xi32>
    %437 = arith.cmpf ogt, %411, %434 : vector<8x128xf32>
    %438 = arith.select %437, %411, %434 : vector<8x128xi1>, vector<8x128xf32>
    %c7_i32 = arith.constant 7 : i32
    %439 = vector.broadcast %c7_i32 : i32 to vector<8x128xi32>
    %440 = arith.select %437, %439, %436 : vector<8x128xi1>, vector<8x128xi32>
    %c0_i32_387 = arith.constant 0 : i32
    %441 = vector.broadcast %c0_i32_387 : i32 to vector<8x128xi32>
    %442 = arith.cmpi eq, %440, %441 : vector<8x128xi32>
    %443 = vector.broadcast %cst : f32 to vector<8x128xf32>
    %444 = arith.select %442, %443, %229 : vector<8x128xi1>, vector<8x128xf32>
    %c1_i32_388 = arith.constant 1 : i32
    %445 = vector.broadcast %c1_i32_388 : i32 to vector<8x128xi32>
    %446 = arith.cmpi eq, %440, %445 : vector<8x128xi32>
    %447 = vector.broadcast %cst : f32 to vector<8x128xf32>
    %448 = arith.select %446, %447, %255 : vector<8x128xi1>, vector<8x128xf32>
    %c2_i32_389 = arith.constant 2 : i32
    %449 = vector.broadcast %c2_i32_389 : i32 to vector<8x128xi32>
    %450 = arith.cmpi eq, %440, %449 : vector<8x128xi32>
    %451 = vector.broadcast %cst : f32 to vector<8x128xf32>
    %452 = arith.select %450, %451, %281 : vector<8x128xi1>, vector<8x128xf32>
    %c3_i32_390 = arith.constant 3 : i32
    %453 = vector.broadcast %c3_i32_390 : i32 to vector<8x128xi32>
    %454 = arith.cmpi eq, %440, %453 : vector<8x128xi32>
    %455 = vector.broadcast %cst : f32 to vector<8x128xf32>
    %456 = arith.select %454, %455, %307 : vector<8x128xi1>, vector<8x128xf32>
    %c4_i32_391 = arith.constant 4 : i32
    %457 = vector.broadcast %c4_i32_391 : i32 to vector<8x128xi32>
    %458 = arith.cmpi eq, %440, %457 : vector<8x128xi32>
    %459 = vector.broadcast %cst : f32 to vector<8x128xf32>
    %460 = arith.select %458, %459, %333 : vector<8x128xi1>, vector<8x128xf32>
    %c5_i32_392 = arith.constant 5 : i32
    %461 = vector.broadcast %c5_i32_392 : i32 to vector<8x128xi32>
    %462 = arith.cmpi eq, %440, %461 : vector<8x128xi32>
    %463 = vector.broadcast %cst : f32 to vector<8x128xf32>
    %464 = arith.select %462, %463, %359 : vector<8x128xi1>, vector<8x128xf32>
    %c6_i32_393 = arith.constant 6 : i32
    %465 = vector.broadcast %c6_i32_393 : i32 to vector<8x128xi32>
    %466 = arith.cmpi eq, %440, %465 : vector<8x128xi32>
    %467 = vector.broadcast %cst : f32 to vector<8x128xf32>
    %468 = arith.select %466, %467, %385 : vector<8x128xi1>, vector<8x128xf32>
    %c7_i32_394 = arith.constant 7 : i32
    %469 = vector.broadcast %c7_i32_394 : i32 to vector<8x128xi32>
    %470 = arith.cmpi eq, %440, %469 : vector<8x128xi32>
    %471 = vector.broadcast %cst : f32 to vector<8x128xf32>
    %472 = arith.select %470, %471, %411 : vector<8x128xi1>, vector<8x128xf32>
    %c0_i32_395 = arith.constant 0 : i32
    %473 = vector.broadcast %c0_i32_395 : i32 to vector<8x128xi32>
    %474 = arith.cmpf ogt, %448, %444 : vector<8x128xf32>
    %475 = arith.select %474, %448, %444 : vector<8x128xi1>, vector<8x128xf32>
    %c1_i32_396 = arith.constant 1 : i32
    %476 = vector.broadcast %c1_i32_396 : i32 to vector<8x128xi32>
    %477 = arith.select %474, %476, %473 : vector<8x128xi1>, vector<8x128xi32>
    %478 = arith.cmpf ogt, %452, %475 : vector<8x128xf32>
    %479 = arith.select %478, %452, %475 : vector<8x128xi1>, vector<8x128xf32>
    %c2_i32_397 = arith.constant 2 : i32
    %480 = vector.broadcast %c2_i32_397 : i32 to vector<8x128xi32>
    %481 = arith.select %478, %480, %477 : vector<8x128xi1>, vector<8x128xi32>
    %482 = arith.cmpf ogt, %456, %479 : vector<8x128xf32>
    %483 = arith.select %482, %456, %479 : vector<8x128xi1>, vector<8x128xf32>
    %c3_i32_398 = arith.constant 3 : i32
    %484 = vector.broadcast %c3_i32_398 : i32 to vector<8x128xi32>
    %485 = arith.select %482, %484, %481 : vector<8x128xi1>, vector<8x128xi32>
    %486 = arith.cmpf ogt, %460, %483 : vector<8x128xf32>
    %487 = arith.select %486, %460, %483 : vector<8x128xi1>, vector<8x128xf32>
    %c4_i32_399 = arith.constant 4 : i32
    %488 = vector.broadcast %c4_i32_399 : i32 to vector<8x128xi32>
    %489 = arith.select %486, %488, %485 : vector<8x128xi1>, vector<8x128xi32>
    %490 = arith.cmpf ogt, %464, %487 : vector<8x128xf32>
    %491 = arith.select %490, %464, %487 : vector<8x128xi1>, vector<8x128xf32>
    %c5_i32_400 = arith.constant 5 : i32
    %492 = vector.broadcast %c5_i32_400 : i32 to vector<8x128xi32>
    %493 = arith.select %490, %492, %489 : vector<8x128xi1>, vector<8x128xi32>
    %494 = arith.cmpf ogt, %468, %491 : vector<8x128xf32>
    %495 = arith.select %494, %468, %491 : vector<8x128xi1>, vector<8x128xf32>
    %c6_i32_401 = arith.constant 6 : i32
    %496 = vector.broadcast %c6_i32_401 : i32 to vector<8x128xi32>
    %497 = arith.select %494, %496, %493 : vector<8x128xi1>, vector<8x128xi32>
    %498 = arith.cmpf ogt, %472, %495 : vector<8x128xf32>
    %499 = arith.select %498, %472, %495 : vector<8x128xi1>, vector<8x128xf32>
    %c7_i32_402 = arith.constant 7 : i32
    %500 = vector.broadcast %c7_i32_402 : i32 to vector<8x128xi32>
    %501 = arith.select %498, %500, %497 : vector<8x128xi1>, vector<8x128xi32>
    %c0_i32_403 = arith.constant 0 : i32
    %502 = vector.broadcast %c0_i32_403 : i32 to vector<8x128xi32>
    %503 = arith.cmpi eq, %501, %502 : vector<8x128xi32>
    %504 = vector.broadcast %cst : f32 to vector<8x128xf32>
    %505 = arith.select %503, %504, %444 : vector<8x128xi1>, vector<8x128xf32>
    %c1_i32_404 = arith.constant 1 : i32
    %506 = vector.broadcast %c1_i32_404 : i32 to vector<8x128xi32>
    %507 = arith.cmpi eq, %501, %506 : vector<8x128xi32>
    %508 = vector.broadcast %cst : f32 to vector<8x128xf32>
    %509 = arith.select %507, %508, %448 : vector<8x128xi1>, vector<8x128xf32>
    %c2_i32_405 = arith.constant 2 : i32
    %510 = vector.broadcast %c2_i32_405 : i32 to vector<8x128xi32>
    %511 = arith.cmpi eq, %501, %510 : vector<8x128xi32>
    %512 = vector.broadcast %cst : f32 to vector<8x128xf32>
    %513 = arith.select %511, %512, %452 : vector<8x128xi1>, vector<8x128xf32>
    %c3_i32_406 = arith.constant 3 : i32
    %514 = vector.broadcast %c3_i32_406 : i32 to vector<8x128xi32>
    %515 = arith.cmpi eq, %501, %514 : vector<8x128xi32>
    %516 = vector.broadcast %cst : f32 to vector<8x128xf32>
    %517 = arith.select %515, %516, %456 : vector<8x128xi1>, vector<8x128xf32>
    %c4_i32_407 = arith.constant 4 : i32
    %518 = vector.broadcast %c4_i32_407 : i32 to vector<8x128xi32>
    %519 = arith.cmpi eq, %501, %518 : vector<8x128xi32>
    %520 = vector.broadcast %cst : f32 to vector<8x128xf32>
    %521 = arith.select %519, %520, %460 : vector<8x128xi1>, vector<8x128xf32>
    %c5_i32_408 = arith.constant 5 : i32
    %522 = vector.broadcast %c5_i32_408 : i32 to vector<8x128xi32>
    %523 = arith.cmpi eq, %501, %522 : vector<8x128xi32>
    %524 = vector.broadcast %cst : f32 to vector<8x128xf32>
    %525 = arith.select %523, %524, %464 : vector<8x128xi1>, vector<8x128xf32>
    %c6_i32_409 = arith.constant 6 : i32
    %526 = vector.broadcast %c6_i32_409 : i32 to vector<8x128xi32>
    %527 = arith.cmpi eq, %501, %526 : vector<8x128xi32>
    %528 = vector.broadcast %cst : f32 to vector<8x128xf32>
    %529 = arith.select %527, %528, %468 : vector<8x128xi1>, vector<8x128xf32>
    %c7_i32_410 = arith.constant 7 : i32
    %530 = vector.broadcast %c7_i32_410 : i32 to vector<8x128xi32>
    %531 = arith.cmpi eq, %501, %530 : vector<8x128xi32>
    %532 = vector.broadcast %cst : f32 to vector<8x128xf32>
    %533 = arith.select %531, %532, %472 : vector<8x128xi1>, vector<8x128xf32>
    %c0_i32_411 = arith.constant 0 : i32
    %534 = vector.broadcast %c0_i32_411 : i32 to vector<8x128xi32>
    %535 = arith.cmpf ogt, %509, %505 : vector<8x128xf32>
    %536 = arith.select %535, %509, %505 : vector<8x128xi1>, vector<8x128xf32>
    %c1_i32_412 = arith.constant 1 : i32
    %537 = vector.broadcast %c1_i32_412 : i32 to vector<8x128xi32>
    %538 = arith.select %535, %537, %534 : vector<8x128xi1>, vector<8x128xi32>
    %539 = arith.cmpf ogt, %513, %536 : vector<8x128xf32>
    %540 = arith.select %539, %513, %536 : vector<8x128xi1>, vector<8x128xf32>
    %c2_i32_413 = arith.constant 2 : i32
    %541 = vector.broadcast %c2_i32_413 : i32 to vector<8x128xi32>
    %542 = arith.select %539, %541, %538 : vector<8x128xi1>, vector<8x128xi32>
    %543 = arith.cmpf ogt, %517, %540 : vector<8x128xf32>
    %544 = arith.select %543, %517, %540 : vector<8x128xi1>, vector<8x128xf32>
    %c3_i32_414 = arith.constant 3 : i32
    %545 = vector.broadcast %c3_i32_414 : i32 to vector<8x128xi32>
    %546 = arith.select %543, %545, %542 : vector<8x128xi1>, vector<8x128xi32>
    %547 = arith.cmpf ogt, %521, %544 : vector<8x128xf32>
    %548 = arith.select %547, %521, %544 : vector<8x128xi1>, vector<8x128xf32>
    %c4_i32_415 = arith.constant 4 : i32
    %549 = vector.broadcast %c4_i32_415 : i32 to vector<8x128xi32>
    %550 = arith.select %547, %549, %546 : vector<8x128xi1>, vector<8x128xi32>
    %551 = arith.cmpf ogt, %525, %548 : vector<8x128xf32>
    %552 = arith.select %551, %525, %548 : vector<8x128xi1>, vector<8x128xf32>
    %c5_i32_416 = arith.constant 5 : i32
    %553 = vector.broadcast %c5_i32_416 : i32 to vector<8x128xi32>
    %554 = arith.select %551, %553, %550 : vector<8x128xi1>, vector<8x128xi32>
    %555 = arith.cmpf ogt, %529, %552 : vector<8x128xf32>
    %556 = arith.select %555, %529, %552 : vector<8x128xi1>, vector<8x128xf32>
    %c6_i32_417 = arith.constant 6 : i32
    %557 = vector.broadcast %c6_i32_417 : i32 to vector<8x128xi32>
    %558 = arith.select %555, %557, %554 : vector<8x128xi1>, vector<8x128xi32>
    %559 = arith.cmpf ogt, %533, %556 : vector<8x128xf32>
    %560 = arith.select %559, %533, %556 : vector<8x128xi1>, vector<8x128xf32>
    %c7_i32_418 = arith.constant 7 : i32
    %561 = vector.broadcast %c7_i32_418 : i32 to vector<8x128xi32>
    %562 = arith.select %559, %561, %558 : vector<8x128xi1>, vector<8x128xi32>
    %563 = arith.subf %499, %438 : vector<8x128xf32>
    %564 = math.exp %563 : vector<8x128xf32>
    %565 = arith.subf %560, %438 : vector<8x128xf32>
    %566 = math.exp %565 : vector<8x128xf32>
    %cst_419 = arith.constant 1.000000e+00 : f32
    %567 = vector.broadcast %cst_419 : f32 to vector<8x128xf32>
    %568 = arith.addf %567, %564 : vector<8x128xf32>
    %569 = arith.addf %568, %566 : vector<8x128xf32>
    %570 = tpu.reciprocal %569 {approx = true} : vector<8x128xf32> -> vector<8x128xf32>
    %571 = arith.mulf %569, %570 : vector<8x128xf32>
    %cst_420 = arith.constant 2.000000e+00 : f32
    %572 = vector.broadcast %cst_420 : f32 to vector<8x128xf32>
    %573 = arith.subf %572, %571 : vector<8x128xf32>
    %574 = arith.mulf %570, %573 : vector<8x128xf32>
    %575 = arith.mulf %564, %574 : vector<8x128xf32>
    %576 = arith.mulf %566, %574 : vector<8x128xf32>
    %cst_421 = arith.constant 0.000000e+00 : f32
    %577 = vector.broadcast %cst_421 : f32 to vector<8x128xf32>
    %c0_i32_422 = arith.constant 0 : i32
    %578 = vector.broadcast %c0_i32_422 : i32 to vector<8x128xi32>
    %579 = arith.cmpi eq, %440, %578 : vector<8x128xi32>
    %580 = arith.select %579, %574, %577 : vector<8x128xi1>, vector<8x128xf32>
    %c0_i32_423 = arith.constant 0 : i32
    %581 = vector.broadcast %c0_i32_423 : i32 to vector<8x128xi32>
    %582 = arith.cmpi eq, %501, %581 : vector<8x128xi32>
    %583 = arith.select %582, %575, %580 : vector<8x128xi1>, vector<8x128xf32>
    %c0_i32_424 = arith.constant 0 : i32
    %584 = vector.broadcast %c0_i32_424 : i32 to vector<8x128xi32>
    %585 = arith.cmpi eq, %562, %584 : vector<8x128xi32>
    %586 = arith.select %585, %576, %583 : vector<8x128xi1>, vector<8x128xf32>
    %c0_425 = arith.constant 0 : index
    %587 = arith.index_cast %201 : i32 to index
    %c0_426 = arith.constant 0 : index
    %588 = vector.load %arg4[%c0_425, %587, %c0_426] : memref<8x8x128xf32, #tpu.memory_space<vmem>>, vector<1x8x128xf32>
    %589 = vector.shape_cast %588 : vector<1x8x128xf32> to vector<8x128xf32>
    %590 = vector.shape_cast %586 : vector<8x128xf32> to vector<1x8x128xf32>
    tpu.vector_store %arg4[%c0_425, %587, %c0_426], %590 {strides = array<i32>} : memref<8x8x128xf32, #tpu.memory_space<vmem>>, vector<1x8x128xf32>,
    %c1_i32_427 = arith.constant 1 : i32
    %591 = vector.broadcast %c1_i32_427 : i32 to vector<8x128xi32>
    %592 = arith.cmpi eq, %440, %591 : vector<8x128xi32>
    %593 = arith.select %592, %574, %577 : vector<8x128xi1>, vector<8x128xf32>
    %c1_i32_428 = arith.constant 1 : i32
    %594 = vector.broadcast %c1_i32_428 : i32 to vector<8x128xi32>
    %595 = arith.cmpi eq, %501, %594 : vector<8x128xi32>
    %596 = arith.select %595, %575, %593 : vector<8x128xi1>, vector<8x128xf32>
    %c1_i32_429 = arith.constant 1 : i32
    %597 = vector.broadcast %c1_i32_429 : i32 to vector<8x128xi32>
    %598 = arith.cmpi eq, %562, %597 : vector<8x128xi32>
    %599 = arith.select %598, %576, %596 : vector<8x128xi1>, vector<8x128xf32>
    %c1_430 = arith.constant 1 : index
    %600 = arith.index_cast %201 : i32 to index
    %c0_431 = arith.constant 0 : index
    %601 = vector.load %arg4[%c1_430, %600, %c0_431] : memref<8x8x128xf32, #tpu.memory_space<vmem>>, vector<1x8x128xf32>
    %602 = vector.shape_cast %601 : vector<1x8x128xf32> to vector<8x128xf32>
    %603 = vector.shape_cast %599 : vector<8x128xf32> to vector<1x8x128xf32>
    tpu.vector_store %arg4[%c1_430, %600, %c0_431], %603 {strides = array<i32>} : memref<8x8x128xf32, #tpu.memory_space<vmem>>, vector<1x8x128xf32>,
    %c2_i32_432 = arith.constant 2 : i32
    %604 = vector.broadcast %c2_i32_432 : i32 to vector<8x128xi32>
    %605 = arith.cmpi eq, %440, %604 : vector<8x128xi32>
    %606 = arith.select %605, %574, %577 : vector<8x128xi1>, vector<8x128xf32>
    %c2_i32_433 = arith.constant 2 : i32
    %607 = vector.broadcast %c2_i32_433 : i32 to vector<8x128xi32>
    %608 = arith.cmpi eq, %501, %607 : vector<8x128xi32>
    %609 = arith.select %608, %575, %606 : vector<8x128xi1>, vector<8x128xf32>
    %c2_i32_434 = arith.constant 2 : i32
    %610 = vector.broadcast %c2_i32_434 : i32 to vector<8x128xi32>
    %611 = arith.cmpi eq, %562, %610 : vector<8x128xi32>
    %612 = arith.select %611, %576, %609 : vector<8x128xi1>, vector<8x128xf32>
    %c2_435 = arith.constant 2 : index
    %613 = arith.index_cast %201 : i32 to index
    %c0_436 = arith.constant 0 : index
    %614 = vector.load %arg4[%c2_435, %613, %c0_436] : memref<8x8x128xf32, #tpu.memory_space<vmem>>, vector<1x8x128xf32>
    %615 = vector.shape_cast %614 : vector<1x8x128xf32> to vector<8x128xf32>
    %616 = vector.shape_cast %612 : vector<8x128xf32> to vector<1x8x128xf32>
    tpu.vector_store %arg4[%c2_435, %613, %c0_436], %616 {strides = array<i32>} : memref<8x8x128xf32, #tpu.memory_space<vmem>>, vector<1x8x128xf32>,
    %c3_i32_437 = arith.constant 3 : i32
    %617 = vector.broadcast %c3_i32_437 : i32 to vector<8x128xi32>
    %618 = arith.cmpi eq, %440, %617 : vector<8x128xi32>
    %619 = arith.select %618, %574, %577 : vector<8x128xi1>, vector<8x128xf32>
    %c3_i32_438 = arith.constant 3 : i32
    %620 = vector.broadcast %c3_i32_438 : i32 to vector<8x128xi32>
    %621 = arith.cmpi eq, %501, %620 : vector<8x128xi32>
    %622 = arith.select %621, %575, %619 : vector<8x128xi1>, vector<8x128xf32>
    %c3_i32_439 = arith.constant 3 : i32
    %623 = vector.broadcast %c3_i32_439 : i32 to vector<8x128xi32>
    %624 = arith.cmpi eq, %562, %623 : vector<8x128xi32>
    %625 = arith.select %624, %576, %622 : vector<8x128xi1>, vector<8x128xf32>
    %c3_440 = arith.constant 3 : index
    %626 = arith.index_cast %201 : i32 to index
    %c0_441 = arith.constant 0 : index
    %627 = vector.load %arg4[%c3_440, %626, %c0_441] : memref<8x8x128xf32, #tpu.memory_space<vmem>>, vector<1x8x128xf32>
    %628 = vector.shape_cast %627 : vector<1x8x128xf32> to vector<8x128xf32>
    %629 = vector.shape_cast %625 : vector<8x128xf32> to vector<1x8x128xf32>
    tpu.vector_store %arg4[%c3_440, %626, %c0_441], %629 {strides = array<i32>} : memref<8x8x128xf32, #tpu.memory_space<vmem>>, vector<1x8x128xf32>,
    %c4_i32_442 = arith.constant 4 : i32
    %630 = vector.broadcast %c4_i32_442 : i32 to vector<8x128xi32>
    %631 = arith.cmpi eq, %440, %630 : vector<8x128xi32>
    %632 = arith.select %631, %574, %577 : vector<8x128xi1>, vector<8x128xf32>
    %c4_i32_443 = arith.constant 4 : i32
    %633 = vector.broadcast %c4_i32_443 : i32 to vector<8x128xi32>
    %634 = arith.cmpi eq, %501, %633 : vector<8x128xi32>
    %635 = arith.select %634, %575, %632 : vector<8x128xi1>, vector<8x128xf32>
    %c4_i32_444 = arith.constant 4 : i32
    %636 = vector.broadcast %c4_i32_444 : i32 to vector<8x128xi32>
    %637 = arith.cmpi eq, %562, %636 : vector<8x128xi32>
    %638 = arith.select %637, %576, %635 : vector<8x128xi1>, vector<8x128xf32>
    %c4_445 = arith.constant 4 : index
    %639 = arith.index_cast %201 : i32 to index
    %c0_446 = arith.constant 0 : index
    %640 = vector.load %arg4[%c4_445, %639, %c0_446] : memref<8x8x128xf32, #tpu.memory_space<vmem>>, vector<1x8x128xf32>
    %641 = vector.shape_cast %640 : vector<1x8x128xf32> to vector<8x128xf32>
    %642 = vector.shape_cast %638 : vector<8x128xf32> to vector<1x8x128xf32>
    tpu.vector_store %arg4[%c4_445, %639, %c0_446], %642 {strides = array<i32>} : memref<8x8x128xf32, #tpu.memory_space<vmem>>, vector<1x8x128xf32>,
    %c5_i32_447 = arith.constant 5 : i32
    %643 = vector.broadcast %c5_i32_447 : i32 to vector<8x128xi32>
    %644 = arith.cmpi eq, %440, %643 : vector<8x128xi32>
    %645 = arith.select %644, %574, %577 : vector<8x128xi1>, vector<8x128xf32>
    %c5_i32_448 = arith.constant 5 : i32
    %646 = vector.broadcast %c5_i32_448 : i32 to vector<8x128xi32>
    %647 = arith.cmpi eq, %501, %646 : vector<8x128xi32>
    %648 = arith.select %647, %575, %645 : vector<8x128xi1>, vector<8x128xf32>
    %c5_i32_449 = arith.constant 5 : i32
    %649 = vector.broadcast %c5_i32_449 : i32 to vector<8x128xi32>
    %650 = arith.cmpi eq, %562, %649 : vector<8x128xi32>
    %651 = arith.select %650, %576, %648 : vector<8x128xi1>, vector<8x128xf32>
    %c5_450 = arith.constant 5 : index
    %652 = arith.index_cast %201 : i32 to index
    %c0_451 = arith.constant 0 : index
    %653 = vector.load %arg4[%c5_450, %652, %c0_451] : memref<8x8x128xf32, #tpu.memory_space<vmem>>, vector<1x8x128xf32>
    %654 = vector.shape_cast %653 : vector<1x8x128xf32> to vector<8x128xf32>
    %655 = vector.shape_cast %651 : vector<8x128xf32> to vector<1x8x128xf32>
    tpu.vector_store %arg4[%c5_450, %652, %c0_451], %655 {strides = array<i32>} : memref<8x8x128xf32, #tpu.memory_space<vmem>>, vector<1x8x128xf32>,
    %c6_i32_452 = arith.constant 6 : i32
    %656 = vector.broadcast %c6_i32_452 : i32 to vector<8x128xi32>
    %657 = arith.cmpi eq, %440, %656 : vector<8x128xi32>
    %658 = arith.select %657, %574, %577 : vector<8x128xi1>, vector<8x128xf32>
    %c6_i32_453 = arith.constant 6 : i32
    %659 = vector.broadcast %c6_i32_453 : i32 to vector<8x128xi32>
    %660 = arith.cmpi eq, %501, %659 : vector<8x128xi32>
    %661 = arith.select %660, %575, %658 : vector<8x128xi1>, vector<8x128xf32>
    %c6_i32_454 = arith.constant 6 : i32
    %662 = vector.broadcast %c6_i32_454 : i32 to vector<8x128xi32>
    %663 = arith.cmpi eq, %562, %662 : vector<8x128xi32>
    %664 = arith.select %663, %576, %661 : vector<8x128xi1>, vector<8x128xf32>
    %c6_455 = arith.constant 6 : index
    %665 = arith.index_cast %201 : i32 to index
    %c0_456 = arith.constant 0 : index
    %666 = vector.load %arg4[%c6_455, %665, %c0_456] : memref<8x8x128xf32, #tpu.memory_space<vmem>>, vector<1x8x128xf32>
    %667 = vector.shape_cast %666 : vector<1x8x128xf32> to vector<8x128xf32>
    %668 = vector.shape_cast %664 : vector<8x128xf32> to vector<1x8x128xf32>
    tpu.vector_store %arg4[%c6_455, %665, %c0_456], %668 {strides = array<i32>} : memref<8x8x128xf32, #tpu.memory_space<vmem>>, vector<1x8x128xf32>,
    %c7_i32_457 = arith.constant 7 : i32
    %669 = vector.broadcast %c7_i32_457 : i32 to vector<8x128xi32>
    %670 = arith.cmpi eq, %440, %669 : vector<8x128xi32>
    %671 = arith.select %670, %574, %577 : vector<8x128xi1>, vector<8x128xf32>
    %c7_i32_458 = arith.constant 7 : i32
    %672 = vector.broadcast %c7_i32_458 : i32 to vector<8x128xi32>
    %673 = arith.cmpi eq, %501, %672 : vector<8x128xi32>
    %674 = arith.select %673, %575, %671 : vector<8x128xi1>, vector<8x128xf32>
    %c7_i32_459 = arith.constant 7 : i32
    %675 = vector.broadcast %c7_i32_459 : i32 to vector<8x128xi32>
    %676 = arith.cmpi eq, %562, %675 : vector<8x128xi32>
    %677 = arith.select %676, %576, %674 : vector<8x128xi1>, vector<8x128xf32>
    %c7_460 = arith.constant 7 : index
    %678 = arith.index_cast %201 : i32 to index
    %c0_461 = arith.constant 0 : index
    %679 = vector.load %arg4[%c7_460, %678, %c0_461] : memref<8x8x128xf32, #tpu.memory_space<vmem>>, vector<1x8x128xf32>
    %680 = vector.shape_cast %679 : vector<1x8x128xf32> to vector<8x128xf32>
    %681 = vector.shape_cast %677 : vector<8x128xf32> to vector<1x8x128xf32>
    tpu.vector_store %arg4[%c7_460, %678, %c0_461], %681 {strides = array<i32>} : memref<8x8x128xf32, #tpu.memory_space<vmem>>, vector<1x8x128xf32>,
    %c8_i32_462 = arith.constant 8 : i32
    %682 = vector.broadcast %c8_i32_462 : i32 to vector<8x128xi32>
    %683 = arith.muli %501, %682 : vector<8x128xi32>
    %684 = arith.addi %440, %683 : vector<8x128xi32>
    %c64_i32 = arith.constant 64 : i32
    %685 = vector.broadcast %c64_i32 : i32 to vector<8x128xi32>
    %686 = arith.muli %562, %685 : vector<8x128xi32>
    %687 = arith.addi %684, %686 : vector<8x128xi32>
    %c0_463 = arith.constant 0 : index
    %688 = arith.index_cast %201 : i32 to index
    %c0_464 = arith.constant 0 : index
    %689 = vector.load %arg5[%c0_463, %688, %c0_464] : memref<1x8x128xi32, #tpu.memory_space<vmem>>, vector<1x8x128xi32>
    %690 = vector.shape_cast %689 : vector<1x8x128xi32> to vector<8x128xi32>
    %691 = vector.shape_cast %687 : vector<8x128xi32> to vector<1x8x128xi32>
    tpu.vector_store %arg5[%c0_463, %688, %c0_464], %691 {strides = array<i32>} : memref<1x8x128xi32, #tpu.memory_space<vmem>>, vector<1x8x128xi32>,
    %c1_i32_465 = arith.constant 1 : i32
    return
  }
  func.func @transform_0(%arg0: i32) -> (i32, i32, i32) {
    %c0_i32 = arith.constant 0 : i32
    %c0_i32_0 = arith.constant 0 : i32
    %c0_i32_1 = arith.constant 0 : i32
    return %c0_i32, %arg0, %c0_i32_0 : i32, i32, i32
  }
  func.func @transform_1(%arg0: i32) -> (i32, i32) {
    %c0_i32 = arith.constant 0 : i32
    %c0_i32_0 = arith.constant 0 : i32
    %c0_i32_1 = arith.constant 0 : i32
    return %c0_i32, %c0_i32_0 : i32, i32
  }
  func.func @transform_2(%arg0: i32) -> i32 {
    %c0_i32 = arith.constant 0 : i32
    %c0_i32_0 = arith.constant 0 : i32
    return %c0_i32 : i32
  }
  func.func @transform_3(%arg0: i32) -> (i32, i32, i32) {
    %c0_i32 = arith.constant 0 : i32
    %c0_i32_0 = arith.constant 0 : i32
    %c0_i32_1 = arith.constant 0 : i32
    return %c0_i32, %arg0, %c0_i32_0 : i32, i32, i32
  }
  func.func @transform_4(%arg0: i32) -> (i32, i32, i32) {
    %c0_i32 = arith.constant 0 : i32
    %c0_i32_0 = arith.constant 0 : i32
    %c0_i32_1 = arith.constant 0 : i32
    return %c0_i32, %arg0, %c0_i32_0 : i32, i32, i32
  }
}

</mosaic_0001>

<bundles_post_ra>
// kernel: tpu_custom_call.1
= control target key start
LH: loop header
LB: loop body
LE: loop exit
PB: predicated region body
PF: predicated region fallthrough
CT: control target
= control target key end

     0   :  { %10 = vsyncpa [#allocation4], 0  ;;  %s1049_s0 = inlined_call_operand.hbm [shape: f32[4,8,128], index: 0, kind: input, shape index: {}]   ;;  %s1050_s1 = inlined_call_operand.vmem [shape: f32[8,4], index: 1, kind: input, shape index: {}]   ;;  %s1051_s2 = inlined_call_operand.vmem [shape: f32[8], index: 2, kind: input, shape index: {}]   ;;  %s1052_s3 = inlined_call_operand.hbm [shape: f32[8,8,128], index: 3, kind: output, shape index: {0}]   ;;  %s1053_s4 = inlined_call_operand.hbm [shape: s32[1,8,128], index: 4, kind: output, shape index: {1}]  }
   0x1   :  { %11 = vsyncpa [#allocation6], 0 }
   0x2   :  { %12 = vsyncpa [#allocation9], 0 }
   0x3   :  { %13 = vsyncpa [#allocation5], 0 }
   0x4   :  { %14 = vsyncpa [#allocation12], 0  ;;  %s684_s15 = smov [#allocation3]   ;;  %s33_s19 = sshll.u32 %s1050_s1, 4  ;;  %s34_s19 = int_to_ptr.vmem [resolvable:$true] %s33_s19 }
   0x5   :  { %s20_s16 = sshll.u32 %s684_s15, 4  ;;  %s584_s22 = scalar_lea.hbm %s1049_s0, 512  ;;  %s21_s16 = int_to_ptr.vmem [resolvable:$true] %s20_s16 }
   0x6   :  { %p585_p0 = scmp.ne.s32.totalorder %s1049_s0, %s584_s22  ;;  %p588_p1 = scmp.lt.u32.totalorder %s584_s22, %s1049_s0 }
   0x8   :  { %p590_p2 = pnand %p588_p1, %p585_p0 }
   0xa   :  { %593 = shalt.err (!%p590_p2)
}
   0xb   :  { %s594_s27 = scalar_lea.vmem %s21_s16, 512  ;;  %p599_p4 = scmp.lt.s32.totalorder %s21_s16, %s21_s16 }
   0xc   :  { %p595_p3 = scmp.ne.s32.totalorder %s21_s16, %s594_s27  ;;  %p600_p5 = scmp.lt.s32.totalorder %s594_s27, %s594_s27 }
   0xe   :  { %p601_p6 = por %p600_p5, %p599_p4 }
  0x10   :  { %p602_p7 = pnand %p601_p6, %p595_p3 }
  0x12   :  { %605 = shalt.err (!%p602_p7)
}
  0x13   :  { %s685_s1 = smov 128   ;;  %s686_s28 = smov 8  }
  0x14   :  { %26 = dma.hbm_to_vmem [thread:$0]  %s1049_s0, 512, %s21_s16, [#allocation4], %s685_s1, %s685_s1, %s686_s28  }
  0x15   :  { %s606_s5 = scalar_lea.vmem %s34_s19, 128  ;;  %p611_p9 = scmp.lt.s32.totalorder %s34_s19, %s34_s19 }
  0x16   :  { %p607_p8 = scmp.ne.s32.totalorder %s34_s19, %s606_s5  ;;  %p612_p10 = scmp.lt.s32.totalorder %s606_s5, %s606_s5 }
  0x18   :  { %p613_p11 = por %p612_p10, %p611_p9 }
  0x1a   :  { %p614_p12 = pnand %p613_p11, %p607_p8 }
  0x1c   :  { %617 = shalt.err (!%p614_p12)
}
  0x1d   :  { %s687_s6 = smov [#allocation7]   ;;  %s43_s9 = sshll.u32 %s1051_s2, 4  ;;  %s44_s9 = int_to_ptr.vmem [resolvable:$true] %s43_s9 }
  0x1e   :  { %36 = dma.vmem_to_smem %s34_s19, 128, %s687_s6, [#allocation6]  }
  0x1f   :  { %s618_s10 = scalar_lea.vmem %s44_s9, 16  ;;  %p623_p0 = scmp.lt.s32.totalorder %s44_s9, %s44_s9 }
  0x20   :  { %p619_p13 = scmp.ne.s32.totalorder %s44_s9, %s618_s10  ;;  %p624_p1 = scmp.lt.s32.totalorder %s618_s10, %s618_s10 }
  0x22   :  { %p625_p2 = por %p624_p1, %p623_p0 }
  0x24   :  { %p626_p3 = pnand %p625_p2, %p619_p13 }
  0x26   :  { %629 = shalt.err (!%p626_p3)
}
  0x27   :  { %s688_s0 = smov [#allocation8]  }
  0x28   :  { %46 = dma.vmem_to_smem %s44_s9, 16, %s688_s0, [#allocation9]  }
  0x29   :  { %674 = dma.done.wait [#allocation4], 512  }
  0x2a   :  { %675 = vsyncadd [#allocation4], 4294966784 }
  0x2b   :  { %676 = dma.done.wait [#allocation6], 128  }
  0x2c   :  { %677 = vsyncadd [#allocation6], 4294967168 }
  0x2d   :  { %678 = dma.done.wait [#allocation9], 16  }
  0x2e   :  { %679 = vsyncadd [#allocation9], 4294967280 }
  0x2f   :  { %56 = sfence }
  0x30   :  { %s57_s11 = sld [smem:[#allocation7]]  ;;  %s532_s12 = sld [smem:[#allocation7 + $0x1]]  ;;  %v752_v0 = vld [vmem:[#allocation3] sm:$0xff]  ;;  %v754_v1 = vld [vmem:[#allocation3 + $0x8] sm:$0xff]  ;;  %v760_v2 = vld [vmem:[#allocation3 + $0x10] sm:$0xff] }
  0x31   :  { %s533_s2 = sld [smem:[#allocation7 + $0x2]]  ;;  %s738_s13 = sld [smem:[#allocation7 + $0x3]]  ;;  %v786_v14 = vld [vmem:[#allocation3 + $0x18] sm:$0xff] }
  0x32   :  { %s740_s14 = sld [smem:[#allocation8]]  ;;  %s744_s16 = sld [smem:[#allocation7 + $0x81]] }
  0x33   :  { %s742_s15 = sld [smem:[#allocation7 + $0x80]]  ;;  %s746_s17 = sld [smem:[#allocation7 + $0x82]] }
  0x34   :  { %s748_s18 = sld [smem:[#allocation7 + $0x83]]  ;;  %s750_s19 = sld [smem:[#allocation8 + $0x1]] }
  0x35   :  { %s756_s20 = sld [smem:[#allocation7 + $0x100]]  ;;  %s758_s21 = sld [smem:[#allocation7 + $0x101]] }
  0x36   :  { %v58_v3 = vstv %s57_s11  ;;  %v61_v4 = vstv %s532_s12  ;;  %s762_s22 = sld [smem:[#allocation7 + $0x102]]  ;;  %s764_s23 = sld [smem:[#allocation7 + $0x103]] }
  0x37   :  { %v65_v5 = vstv %s533_s2  ;;  %s766_s24 = sld [smem:[#allocation8 + $0x2]]  ;;  %s768_s25 = sld [smem:[#allocation7 + $0x180]]  ;;  %v222_v6 = vmul.f32 %v752_v0, %v58_v3  ;;  %v225_v7 = vmul.f32 %v754_v1, %v61_v4  ;;  %v69_v8 = vstv %s738_s13 }
  0x38   :  { %v73_v9 = vstv %s740_s14  ;;  %s775_s26 = sld [smem:[#allocation7 + $0x181]]  ;;  %s777_s27 = sld [smem:[#allocation7 + $0x182]]  ;;  %v228_v11 = vmul.f32 %v760_v2, %v65_v5  ;;  %v81_v12 = vstv %s744_s16  ;;  %v231_v25 = vmul.f32 %v786_v14, %v69_v8 }
  0x39   :  { %v77_v10 = vstv %s742_s15  ;;  %v85_v13 = vstv %s746_s17  ;;  %s782_s29 = sld [smem:[#allocation7 + $0x183]]  ;;  %v223_v15 = vadd.f32 %v222_v6, %v73_v9  ;;  %s790_s5 = sld [smem:[#allocation7 + $0x200]]  ;;  %v238_v18 = vmul.f32 %v754_v1, %v81_v12 }
  0x3a   :  { %s784_s30 = sld [smem:[#allocation8 + $0x3]]  ;;  %v235_v16 = vmul.f32 %v752_v0, %v77_v10  ;;  %v93_v17 = vstv %s750_s19  ;;  %s792_s6 = sld [smem:[#allocation7 + $0x201]]  ;;  %v241_v19 = vmul.f32 %v760_v2, %v85_v13  ;;  %v89_v24 = vstv %s748_s18 }
  0x3b   :  { %v97_v20 = vstv %s756_s20  ;;  %v101_v21 = vstv %s758_s21  ;;  %s798_s7 = sld [smem:[#allocation7 + $0x202]]  ;;  %s800_s8 = sld [smem:[#allocation7 + $0x203]]  ;;  %v226_v22 = vadd.f32 %v225_v7, %v223_v15  ;;  %v244_v37 = vmul.f32 %v786_v14, %v89_v24 }
  0x3c   :  { %v236_v23 = vadd.f32 %v235_v16, %v93_v17  ;;  %s803_s9 = sld [smem:[#allocation8 + $0x4]]  ;;  %s805_s10 = sld [smem:[#allocation7 + $0x280]]  ;;  %v248_v26 = vmul.f32 %v752_v0, %v97_v20  ;;  %v105_v27 = vstv %s762_s22  ;;  %v109_v31 = vstv %s764_s23 }
  0x3d   :  { %v113_v28 = vstv %s766_s24  ;;  %s811_s0 = sld [smem:[#allocation7 + $0x281]]  ;;  %s813_s11 = sld [smem:[#allocation7 + $0x282]]  ;;  %v229_v29 = vadd.f32 %v228_v11, %v226_v22  ;;  %v251_v33 = vmul.f32 %v754_v1, %v101_v21  ;;  %v117_v34 = vstv %s768_s25 }
  0x3e   :  { %v239_v30 = vadd.f32 %v238_v18, %v236_v23  ;;  %s816_s12 = sld [smem:[#allocation7 + $0x283]]  ;;  %s818_s2 = sld [smem:[#allocation8 + $0x5]]  ;;  %v249_v32 = vadd.f32 %v248_v26, %v113_v28  ;;  %v121_v35 = vstv %s775_s26  ;;  %v125_v38 = vstv %s777_s27 }
  0x3f   :  { %s823_s13 = sld [smem:[#allocation7 + $0x300]]  ;;  %s825_s14 = sld [smem:[#allocation7 + $0x301]]  ;;  %v129_v39 = vstv %s782_s29  ;;  %v254_v41 = vmul.f32 %v760_v2, %v105_v27  ;;  %v137_v43 = vstv %s790_s5  ;;  %v842_v45 = vadd.f32 %v231_v25, %v229_v29 }
  0x40   :  { %v242_v36 = vadd.f32 %v241_v19, %v239_v30  ;;  %s830_s15 = sld [smem:[#allocation7 + $0x302]]  ;;  %s832_s16 = sld [smem:[#allocation7 + $0x303]]  ;;  %v252_v40 = vadd.f32 %v251_v33, %v249_v32  ;;  %v133_v42 = vstv %s784_s30  ;;  %v141_v44 = vstv %s792_s6 }
  0x41   :  { %s838_s17 = sld [smem:[#allocation8 + $0x6]]  ;;  %s840_s18 = sld [smem:[#allocation7 + $0x380]]  ;;  %v145_v46 = vstv %s798_s7  ;;  %v257_v48 = vmul.f32 %v786_v14, %v109_v31  ;;  %v261_v49 = vmul.f32 %v752_v0, %v117_v34  ;;  %v149_v50 = vstv %s800_s8 }
  0x42   :  { %s845_s19 = sld [smem:[#allocation7 + $0x381]]  ;;  %s847_s20 = sld [smem:[#allocation7 + $0x382]]  ;;  %v255_v47 = vadd.f32 %v254_v41, %v252_v40  ;;  %v153_v51 = vstv %s803_s9  ;;  %v855_v52 = vadd.f32 %v244_v37, %v242_v36  ;;  %v264_v53 = vmul.f32 %v754_v1, %v121_v35 }
  0x43   :  { %s853_s21 = sld [smem:[#allocation8 + $0x7]]  ;;  %v157_v54 = vstv %s805_s10  ;;  %v161_v55 = vstv %s811_s0  ;;  %v165_v56 = vstv %s813_s11  ;;  %s861_s22 = sld [smem:[#allocation7 + $0x383]]  ;;  %v262_v57 = vadd.f32 %v261_v49, %v133_v42 }
  0x44   :  { %v169_v58 = vstv %s816_s12  ;;  %v173_v59 = vstv %s818_s2  ;;  %v267_v60 = vmul.f32 %v760_v2, %v125_v38  ;;  %v274_v61 = vmul.f32 %v752_v0, %v137_v43  ;;  %s690_s23 = smov [#allocation11]  }
  0x45   :  { %v177_v62 = vstv %s823_s13  ;;  %v868_v63 = vadd.f32 %v257_v48, %v255_v47  ;;  %v265_v3 = vadd.f32 %v264_v53, %v262_v57  ;;  %v277_v4 = vmul.f32 %v754_v1, %v141_v44  ;;  %s510_s24 = sshll.u32 %s690_s23, 4  ;;  %s511_s24 = int_to_ptr.vmem [resolvable:$true] %s510_s24 }
  0x46   :  { %v181_v5 = vstv %s825_s14  ;;  %v185_v6 = vstv %s830_s15  ;;  %v270_v7 = vmul.f32 %v786_v14, %v129_v39  ;;  %v275_v8 = vadd.f32 %v274_v61, %v153_v51  ;;  %s630_s25 = scalar_lea.vmem %s511_s24, 128  ;;  %p635_p5 = scmp.lt.s32.totalorder %s511_s24, %s511_s24 }
  0x47   :  { %v189_v9 = vstv %s832_s16  ;;  %v193_v10 = vstv %s838_s17  ;;  %v197_v11 = vstv %s840_s18  ;;  %v280_v12 = vmul.f32 %v760_v2, %v145_v46  ;;  %p631_p4 = scmp.ne.s32.totalorder %s511_s24, %s630_s25  ;;  %p636_p6 = scmp.lt.s32.totalorder %s630_s25, %s630_s25 }
  0x48   :  { %v201_v13 = vstv %s845_s19  ;;  %v268_v15 = vadd.f32 %v267_v60, %v265_v3  ;;  %v278_v16 = vadd.f32 %v277_v4, %v275_v8  ;;  %v287_v17 = vmul.f32 %v752_v0, %v157_v54 }
  0x49   :  { %v205_v18 = vstv %s847_s20  ;;  %v213_v19 = vstv %s853_s21  ;;  %v283_v20 = vmul.f32 %v786_v14, %v149_v50  ;;  %v290_v21 = vmul.f32 %v754_v1, %v161_v55  ;;  %p637_p7 = por %p636_p6, %p635_p5 }
  0x4a   :  { %v288_v22 = vadd.f32 %v287_v17, %v173_v59  ;;  %v293_v23 = vmul.f32 %v760_v2, %v165_v56  ;;  %v300_v24 = vmul.f32 %v752_v0, %v177_v62  ;;  %v303_v25 = vmul.f32 %v754_v1, %v181_v5 }
  0x4b   :  { %v209_v26 = vstv %s861_s22  ;;  %v281_v27 = vadd.f32 %v280_v12, %v278_v16  ;;  %v313_v28 = vmul.f32 %v752_v0, %v197_v11  ;;  %v316_v29 = vmul.f32 %v754_v1, %v201_v13  ;;  %p638_p8 = pnand %p637_p7, %p631_p4 }
  0x4c   :  { %v271_v30 = vadd.f32 %v270_v7, %v268_v15  ;;  %v291_v31 = vadd.f32 %v290_v21, %v288_v22  ;;  %v301_v32 = vadd.f32 %v300_v24, %v193_v10  ;;  %v306_v33 = vmul.f32 %v760_v2, %v185_v6 }
  0x4d   :  { %v296_v34 = vmul.f32 %v786_v14, %v169_v58  ;;  %v314_v35 = vadd.f32 %v313_v28, %v213_v19  ;;  %v319_v36 = vmul.f32 %v760_v2, %v205_v18  ;;  %vm324_vm0 = vcmp.gt.f32.partialorder %v855_v52, %v842_v45 }
  0x4e   :  { %v294_v37 = vadd.f32 %v293_v23, %v291_v31  ;;  %v304_v38 = vadd.f32 %v303_v25, %v301_v32  ;;  %v325_v0 = vsel %vm324_vm0, %v855_v52, %v842_v45  ;;  %v689_v39 = vmov 0  }
  0x4f   :  { %v326_v1 = vsel %vm324_vm0, 1, %v689_v39  ;;  %v284_v40 = vadd.f32 %v283_v20, %v281_v27  ;;  %v309_v41 = vmul.f32 %v786_v14, %v189_v9  ;;  %v317_v42 = vadd.f32 %v316_v29, %v314_v35 }
  0x50   :  { %vm327_vm1 = vcmp.gt.f32.partialorder %v868_v63, %v325_v0  ;;  %v307_v43 = vadd.f32 %v306_v33, %v304_v38  ;;  %v297_v46 = vadd.f32 %v296_v34, %v294_v37  ;;  %v322_v48 = vmul.f32 %v786_v14, %v209_v26 }
  0x51   :  { %v328_v2 = vsel %vm327_vm1, %v868_v63, %v325_v0  ;;  %v329_v44 = vsel %vm327_vm1, 2, %v326_v1  ;;  %v320_v47 = vadd.f32 %v319_v36, %v317_v42 }
  0x52   :  { %vm330_vm2 = vcmp.gt.f32.partialorder %v271_v30, %v328_v2  ;;  %v310_v51 = vadd.f32 %v309_v41, %v307_v43 }
  0x53   :  { %v331_v49 = vsel %vm330_vm2, %v271_v30, %v328_v2  ;;  %v332_v50 = vsel %vm330_vm2, 3, %v329_v44  ;;  %v323_v55 = vadd.f32 %v322_v48, %v320_v47 }
  0x54   :  { %vm333_vm3 = vcmp.gt.f32.partialorder %v284_v40, %v331_v49 }
  0x55   :  { %v334_v53 = vsel %vm333_vm3, %v284_v40, %v331_v49  ;;  %v335_v54 = vsel %vm333_vm3, 4, %v332_v50 }
  0x56   :  { %vm336_vm4 = vcmp.gt.f32.partialorder %v297_v46, %v334_v53 }
  0x57   :  { %v337_v56 = vsel %vm336_vm4, %v297_v46, %v334_v53  ;;  %v338_v57 = vsel %vm336_vm4, 5, %v335_v54 }
  0x58   :  { %vm339_vm5 = vcmp.gt.f32.partialorder %v310_v51, %v337_v56 }
  0x59   :  { %v340_v58 = vsel %vm339_vm5, %v310_v51, %v337_v56  ;;  %v341_v59 = vsel %vm339_vm5, 6, %v338_v57 }
  0x5a   :  { %vm342_vm6 = vcmp.gt.f32.partialorder %v323_v55, %v340_v58 }
  0x5b   :  { %v903_v60 = vsel %vm342_vm6, 7, %v341_v59  ;;  %v343_v22 = vsel %vm342_vm6, %v323_v55, %v340_v58 }
  0x5c   :  { %vm345_vm7 = vcmp.eq.s32.totalorder %v903_v60, 0  ;;  %vm347_vm8 = vcmp.eq.s32.totalorder %v903_v60, 1  ;;  %vm349_vm9 = vcmp.eq.s32.totalorder %v903_v60, 2  ;;  %vm351_vm10 = vcmp.eq.s32.totalorder %v903_v60, 3 }
  0x5d   :  { %v346_v14 = vsel %vm345_vm7, -inf, %v842_v45  ;;  %v348_v61 = vsel %vm347_vm8, -inf, %v855_v52  ;;  %v350_v62 = vsel %vm349_vm9, -inf, %v868_v63  ;;  %vm353_vm11 = vcmp.eq.s32.totalorder %v903_v60, 4 }
  0x5e   :  { %vm361_vm12 = vcmp.gt.f32.partialorder %v348_v61, %v346_v14  ;;  %v352_v3 = vsel %vm351_vm10, -inf, %v271_v30  ;;  %vm355_vm13 = vcmp.eq.s32.totalorder %v903_v60, 5  ;;  %v354_v45 = vsel %vm353_vm11, -inf, %v284_v40 }
  0x5f   :  { %v362_v4 = vsel %vm361_vm12, %v348_v61, %v346_v14  ;;  %v363_v5 = vsel %vm361_vm12, 1, %v689_v39  ;;  %vm1055_vm15 = vcmp.eq.s32.totalorder %v903_v60, 6  ;;  %v356_v63 = vsel %vm355_vm13, -inf, %v297_v46 }
  0x60   :  { %vm364_vm14 = vcmp.gt.f32.partialorder %v350_v62, %v362_v4  ;;  %vm1054_vm1 = vcmp.eq.s32.totalorder %v903_v60, 7  ;;  %v358_v9 = vsel %vm1055_vm15, -inf, %v310_v51 }
  0x61   :  { %v365_v52 = vsel %vm364_vm14, %v350_v62, %v362_v4  ;;  %v366_v6 = vsel %vm364_vm14, 2, %v363_v5  ;;  %v360_v12 = vsel %vm1054_vm1, -inf, %v323_v55 }
  0x62   :  { %vm367_vm0 = vcmp.gt.f32.partialorder %v352_v3, %v365_v52 }
  0x63   :  { %v368_v7 = vsel %vm367_vm0, %v352_v3, %v365_v52  ;;  %v369_v8 = vsel %vm367_vm0, 3, %v366_v6 }
  0x64   :  { %vm370_vm2 = vcmp.gt.f32.partialorder %v354_v45, %v368_v7 }
  0x65   :  { %v371_v10 = vsel %vm370_vm2, %v354_v45, %v368_v7  ;;  %v372_v11 = vsel %vm370_vm2, 4, %v369_v8 }
  0x66   :  { %vm373_vm3 = vcmp.gt.f32.partialorder %v356_v63, %v371_v10 }
  0x67   :  { %v374_v13 = vsel %vm373_vm3, %v356_v63, %v371_v10  ;;  %v375_v15 = vsel %vm373_vm3, 5, %v372_v11 }
  0x68   :  { %vm376_vm4 = vcmp.gt.f32.partialorder %v358_v9, %v374_v13 }
  0x69   :  { %v377_v16 = vsel %vm376_vm4, %v358_v9, %v374_v13  ;;  %v378_v17 = vsel %vm376_vm4, 6, %v375_v15 }
  0x6a   :  { %vm379_vm5 = vcmp.gt.f32.partialorder %v360_v12, %v377_v16 }
  0x6b   :  { %v933_v18 = vsel %vm379_vm5, 7, %v378_v17  ;;  %v380_v23 = vsel %vm379_vm5, %v360_v12, %v377_v16 }
  0x6c   :  { %vm382_vm12 = vcmp.eq.s32.totalorder %v933_v18, 0  ;;  %vm384_vm14 = vcmp.eq.s32.totalorder %v933_v18, 1  ;;  %vm1056_vm0 = vcmp.eq.s32.totalorder %v933_v18, 2  ;;  %vm1061_vm2 = vcmp.eq.s32.totalorder %v933_v18, 3 }
  0x6d   :  { %v383_v19 = vsel %vm382_vm12, -inf, %v346_v14  ;;  %v385_v20 = vsel %vm384_vm14, -inf, %v348_v61  ;;  %v387_v21 = vsel %vm1056_vm0, -inf, %v350_v62  ;;  %vm1057_vm3 = vcmp.eq.s32.totalorder %v933_v18, 4 }
  0x6e   :  { %vm398_vm4 = vcmp.gt.f32.partialorder %v385_v20, %v383_v19  ;;  %v389_v24 = vsel %vm1061_vm2, -inf, %v352_v3  ;;  %vm1060_vm1 = vcmp.eq.s32.totalorder %v933_v18, 5  ;;  %v391_v27 = vsel %vm1057_vm3, -inf, %v354_v45 }
  0x6f   :  { %v399_v25 = vsel %vm398_vm4, %v385_v20, %v383_v19  ;;  %v400_v26 = vsel %vm398_vm4, 1, %v689_v39  ;;  %vm1059_vm6 = vcmp.eq.s32.totalorder %v933_v18, 6  ;;  %v419_v30 = vsub.f32 %v380_v23, %v343_v22 }
  0x70   :  { %vm401_vm15 = vcmp.gt.f32.partialorder %v387_v21, %v399_v25  ;;  %v393_v31 = vsel %vm1060_vm1, -inf, %v356_v63  ;;  %vm1058_vm5 = vcmp.eq.s32.totalorder %v933_v18, 7  ;;  %v395_v34 = vsel %vm1059_vm6, -inf, %v358_v9 }
  0x71   :  { %v402_v28 = vsel %vm401_vm15, %v387_v21, %v399_v25  ;;  %v403_v29 = vsel %vm401_vm15, 2, %v400_v26  ;;  %v420_v37 = vmul.f32 1.442695, %v419_v30  ;;  %v397_v38 = vsel %vm1058_vm5, -inf, %v360_v12 }
  0x72   :  { %vm404_vm0 = vcmp.gt.f32.partialorder %v389_v24, %v402_v28  ;;  %v487_v1 = vmul.u32 8, %v933_v18 }
  0x73   :  { %v405_v32 = vsel %vm404_vm0, %v389_v24, %v402_v28  ;;  %v406_v33 = vsel %vm404_vm0, 3, %v403_v29  ;;  %578 = vpow2.f32 %v420_v37 }
  0x74   :  { %vm407_vm4 = vcmp.gt.f32.partialorder %v391_v27, %v405_v32  ;;  %v488_v44 = vadd.s32 %v487_v1, %v903_v60 }
  0x75   :  { %v408_v35 = vsel %vm407_vm4, %v391_v27, %v405_v32  ;;  %v409_v36 = vsel %vm407_vm4, 4, %v406_v33 }
  0x76   :  { %vm410_vm3 = vcmp.gt.f32.partialorder %v393_v31, %v408_v35 }
  0x77   :  { %v411_v0 = vsel %vm410_vm3, %v393_v31, %v408_v35  ;;  %v412_v39 = vsel %vm410_vm3, 5, %v409_v36 }
  0x78   :  { %vm413_vm15 = vcmp.gt.f32.partialorder %v395_v34, %v411_v0 }
  0x79   :  { %v414_v40 = vsel %vm413_vm15, %v395_v34, %v411_v0  ;;  %v415_v41 = vsel %vm413_vm15, 6, %v412_v39 }
  0x7a   :  { %vm416_vm0 = vcmp.gt.f32.partialorder %v397_v38, %v414_v40 }
  0x7b   :  { %v417_v42 = vsel %vm416_vm0, %v397_v38, %v414_v40  ;;  %v962_v43 = vsel %vm416_vm0, 7, %v415_v41 }
  0x7c   :  { %v422_v2 = vsub.f32 %v417_v42, %v343_v22  ;;  %v489_v47 = vmul.u32 64, %v962_v43 }
  0x7e   :  { %v423_v46 = vmul.f32 1.442695, %v422_v2  ;;  %v490_v48 = vadd.s32 %v489_v47, %v488_v44 }
  0x80   :  { %580 = vpow2.f32 %v423_v46  ;;  %491 = vst [vmem:[#allocation11] sm:$0xff] %v490_v48 }
  0x81   :  { %641 = shalt.err (!%p638_p8)
}
  0x82   :  { %s642_s29 = scalar_lea.hbm %s1053_s4, 128 }
  0x83   :  { %p643_p9 = scmp.ne.s32.totalorder %s1053_s4, %s642_s29  ;;  %p646_p10 = scmp.lt.u32.totalorder %s642_s29, %s1053_s4 }
  0x85   :  { %p648_p11 = pnand %p646_p10, %p643_p9 }
  0x87   :  { %651 = shalt.err (!%p648_p11)
}
  0x88   :  { %513 = dma.vmem_to_hbm [thread:$0]  %s511_s24, 128, %s1053_s4, [#allocation12]   ;;  %v579_v49 = vpop.eup %578  ;;  %vm435_vm3 = vcmp.eq.s32.totalorder %v962_v43, 0  ;;  %vm440_vm4 = vcmp.eq.s32.totalorder %v962_v43, 1  ;;  %vm447_vm15 = vcmp.eq.s32.totalorder %v962_v43, 2  ;;  %vm454_vm0 = vcmp.eq.s32.totalorder %v962_v43, 3 }
  0x89   :  { %v425_v50 = vadd.f32 1.0, %v579_v49  ;;  %vm461_vm5 = vcmp.eq.s32.totalorder %v962_v43, 4  ;;  %vm468_vm6 = vcmp.eq.s32.totalorder %v962_v43, 5  ;;  %vm475_vm1 = vcmp.eq.s32.totalorder %v962_v43, 6  ;;  %s691_s4 = smov [#allocation10]  }
  0x8a   :  { %v581_v51 = vpop.eup %580  ;;  %vm482_vm2 = vcmp.eq.s32.totalorder %v962_v43, 7  ;;  %s497_s10 = sshll.u32 %s691_s4, 4  ;;  %s498_s10 = int_to_ptr.vmem [resolvable:$true] %s497_s10 }
  0x8b   :  { %v426_v53 = vadd.f32 %v581_v51, %v425_v50  ;;  %s652_s0 = scalar_lea.vmem %s498_s10, 1024  ;;  %p657_p13 = scmp.lt.s32.totalorder %s498_s10, %s498_s10 }
  0x8c   :  { %p653_p12 = scmp.ne.s32.totalorder %s498_s10, %s652_s0  ;;  %p658_p0 = scmp.lt.s32.totalorder %s652_s0, %s652_s0 }
  0x8d   :  { %582 = vrcp.f32 %v426_v53 }
  0x8e   :  { %p659_p1 = por %p658_p0, %p657_p13 }
  0x90   :  { %p660_p2 = pnand %p659_p1, %p653_p12 }
  0x97   :  { %v583_v54 = vpop.eup %582 }
  0x98   :  { %v428_v55 = vmul.f32 %v583_v54, %v426_v53 }
  0x9a   :  { %v429_v56 = vsub.f32 2.0, %v428_v55 }
  0x9c   :  { %v430_v57 = vmul.f32 %v583_v54, %v429_v56 }
  0x9e   :  { %v431_v58 = vmul.f32 %v579_v49, %v430_v57  ;;  %v432_v59 = vmul.f32 %v581_v51, %v430_v57  ;;  %v433_v14 = vsel %vm345_vm7, %v430_v57, 0.0  ;;  %v438_v61 = vsel %vm347_vm8, %v430_v57, 0.0 }
  0x9f   :  { %v445_v62 = vsel %vm349_vm9, %v430_v57, 0.0  ;;  %v452_v3 = vsel %vm351_vm10, %v430_v57, 0.0  ;;  %v459_v4 = vsel %vm353_vm11, %v430_v57, 0.0  ;;  %v466_v5 = vsel %vm355_vm13, %v430_v57, 0.0 }
  0xa0   :  { %v434_v45 = vsel %vm382_vm12, %v431_v58, %v433_v14  ;;  %v439_v52 = vsel %vm384_vm14, %v431_v58, %v438_v61  ;;  %vm1062_vm7 = vcmp.eq.s32.totalorder %v933_v18, 2  ;;  %vm1063_vm8 = vcmp.eq.s32.totalorder %v933_v18, 3 }
  0xa1   :  { %v446_v6 = vsel %vm1062_vm7, %v431_v58, %v445_v62  ;;  %v453_v63 = vsel %vm1063_vm8, %v431_v58, %v452_v3  ;;  %v436_v7 = vsel %vm435_vm3, %v432_v59, %v434_v45  ;;  %v441_v8 = vsel %vm440_vm4, %v432_v59, %v439_v52 }
  0xa2   :  { %v448_v9 = vsel %vm447_vm15, %v432_v59, %v446_v6  ;;  %v455_v10 = vsel %vm454_vm0, %v432_v59, %v453_v63  ;;  %437 = vst [vmem:[#allocation10] sm:$0xff] %v436_v7  ;;  %444 = vst [vmem:[#allocation10 + $0x8] sm:$0xff] %v441_v8  ;;  %vm1064_vm9 = vcmp.eq.s32.totalorder %v933_v18, 4  ;;  %vm1065_vm10 = vcmp.eq.s32.totalorder %v933_v18, 5 }
  0xa3   :  { %451 = vst [vmem:[#allocation10 + $0x10] sm:$0xff] %v448_v9  ;;  %458 = vst [vmem:[#allocation10 + $0x18] sm:$0xff] %v455_v10  ;;  %v460_v11 = vsel %vm1064_vm9, %v431_v58, %v459_v4  ;;  %v467_v12 = vsel %vm1065_vm10, %v431_v58, %v466_v5  ;;  %vm1066_vm11 = vcmp.eq.s32.totalorder %v903_v60, 6  ;;  %vm1067_vm13 = vcmp.eq.s32.totalorder %v903_v60, 7 }
  0xa4   :  { %v473_v13 = vsel %vm1066_vm11, %v430_v57, 0.0  ;;  %v480_v15 = vsel %vm1067_vm13, %v430_v57, 0.0  ;;  %v462_v16 = vsel %vm461_vm5, %v432_v59, %v460_v11  ;;  %v469_v17 = vsel %vm468_vm6, %v432_v59, %v467_v12 }
  0xa5   :  { %vm1068_vm12 = vcmp.eq.s32.totalorder %v933_v18, 6  ;;  %vm1069_vm14 = vcmp.eq.s32.totalorder %v933_v18, 7  ;;  %465 = vst [vmem:[#allocation10 + $0x20] sm:$0xff] %v462_v16  ;;  %472 = vst [vmem:[#allocation10 + $0x28] sm:$0xff] %v469_v17 }
  0xa6   :  { %v474_v19 = vsel %vm1068_vm12, %v431_v58, %v473_v13  ;;  %v481_v20 = vsel %vm1069_vm14, %v431_v58, %v480_v15 }
  0xa7   :  { %v476_v21 = vsel %vm475_vm1, %v432_v59, %v474_v19  ;;  %v483_v60 = vsel %vm482_vm2, %v432_v59, %v481_v20 }
  0xa8   :  { %479 = vst [vmem:[#allocation10 + $0x30] sm:$0xff] %v476_v21  ;;  %486 = vst [vmem:[#allocation10 + $0x38] sm:$0xff] %v483_v60 }
  0xa9   :  { %663 = shalt.err (!%p660_p2)
}
  0xaa   :  { %s664_s2 = scalar_lea.hbm %s1052_s3, 1024 }
  0xab   :  { %p665_p3 = scmp.ne.s32.totalorder %s1052_s3, %s664_s2  ;;  %p668_p4 = scmp.lt.u32.totalorder %s664_s2, %s1052_s3 }
  0xad   :  { %p670_p5 = pnand %p668_p4, %p665_p3 }
  0xaf   :  { %673 = shalt.err (!%p670_p5)
}
  0xb0   :  { %503 = dma.vmem_to_hbm [thread:$0]  %s498_s10, 1024, %s1052_s3, [#allocation5], %s685_s1, %s685_s1, %s686_s28  }
  0xb1   :  { %680 = dma.done.wait [#allocation5], 1024  }
  0xb2   :  { %681 = vsyncadd [#allocation5], 4294966272 }
  0xb3   :  { %682 = dma.done.wait [#allocation12], 128  }
  0xb4   :  { %683 = vsyncadd [#allocation12], 4294967168 }
  0xb5   :  { %520 = vsyncpa [#allocation4], 1 }
  0xb6   :  { %521 = vsyncpa [#allocation5], 1 }
  0xb7   :  { %522 = vsyncpa [#allocation12], 1 }
  0xb8   :  { %523 = vsyncpa [#allocation6], 1 }
  0xb9   :  { %524 = vsyncpa [#allocation9], 1 }

</bundles_post_ra>
